<compile_context>
chip_gen: v5e
topology: v5e:2x2
jax: 0.10.0
libtpu: 0.0.40
codegen_flags: <defaults>
</compile_context>

<pallas_src>
import functools

import jax
import jax.numpy as jnp
from jax.experimental import pallas as pl
from jax.experimental.pallas import tpu as pltpu


def _round_up(a, b):
    return (a + b - 1) // b * b


def _largest_divisor_leq(n, cap):
    cap = max(1, min(n, cap))
    for c in range(cap, 0, -1):
        if n % c == 0:
            return c
    return 1


def _styled_conv_kernel(*refs, k, img_w, hwp):
    """One grid step = (sample n, output depth plane d).

    refs = (x_plane_d, ..., x_plane_{d+k-1},   each (1, 1, Cin_p, HWin) bf16
            wmod,                              (1, k, k*k, Cout, Cin_p) bf16  per-sample
            bias,                              (Cout, 1) f32
            mask,                              (1, hwp) f32   1 at valid (h<Ho, w<Wo)
            y,                                 (1, 1, Cout, hwp) bf16  conv output plane
            psum, psq)                         (1, 1, Cout, 1) f32     BN partial stats
    """
    x_refs = refs[:k]
    w_ref, bias_ref, mask_ref, y_ref, psum_ref, psq_ref = refs[k:]

    acc = None
    for kd in range(k):
        xp = x_refs[kd][0, 0]                              # (Cin_p, HWin) bf16
        for t in range(k * k):
            kh, kw = t // k, t % k
            o2 = kh * img_w + kw                           # static in-plane tap offset
            xs = xp[:, o2:o2 + hwp]                        # (Cin_p, hwp) lane-shifted slice
            d = jnp.dot(w_ref[0, kd, t], xs,
                        preferred_element_type=jnp.float32)  # (Cout, hwp) f32
            acc = d if acc is None else acc + d

    # bias + mask (masked lanes -> exactly 0 so the fused BN statistics stay exact)
    yv = (acc + bias_ref[...]) * mask_ref[...]             # (Cout, hwp) f32
    y_ref[0, 0] = yv.astype(y_ref.dtype)
    psum_ref[0, 0] = jnp.sum(yv, axis=1, keepdims=True)
    psq_ref[0, 0] = jnp.sum(yv * yv, axis=1, keepdims=True)


def _bn_lrelu_kernel(y_ref, scale_ref, shift_ref, o_ref):
    """Precomputed BatchNorm scale/shift + LeakyReLU(0.01) on a (td, Cout, hwp) tile."""
    z = y_ref[0].astype(jnp.float32) * scale_ref[...] + shift_ref[...]
    o_ref[0] = jnp.where(z >= 0.0, z, 0.01 * z)


def conv_styled_block_forward(x, s, params, kernel_size=3):
    """seq='CBA' forward: ConvStyled3d -> BatchNorm3d(batch stats) -> LeakyReLU(0.01)."""
    N, Cin, D, H, W = x.shape
    k = kernel_size
    Do, Ho, Wo = D - k + 1, H - k + 1, W - k + 1           # stride=1, no padding
    HW = H * W
    HWp = _round_up(HW, 128)                               # lane-dense output plane
    HWin = HWp + _round_up((k - 1) * (W + 1), 128)         # halo for in-plane tap shifts
    Cin_p = _round_up(Cin, 8)                              # sublane-aligned contraction

    weight = params["weight"].astype(jnp.float32)          # (Cout, Cin, k, k, k)
    Cout = weight.shape[0]

    # ---- glue (one light pass over x): bf16 cast FIRST, then (N, D, Cin_p, HWin) planes --
    xq = jnp.transpose(x.astype(jnp.bfloat16), (0, 2, 1, 3, 4)).reshape(N, D, Cin, HW)
    xq = jnp.pad(xq, ((0, 0), (0, 0), (0, Cin_p - Cin), (0, HWin - HW)))

    # ---- per-sample modulated + demodulated weight table (tiny; hoisted out of kernel) --
    style_w = params["style_weight"].astype(jnp.float32)              # (Cin, S)
    style_b = params["style_bias"].astype(jnp.float32)                # (Cin,)
    style = s.astype(jnp.float32) @ style_w.T + style_b               # (N, Cin)
    wsq = jnp.sum(weight ** 2, axis=(2, 3, 4))                        # (Cout, Cin)
    demod = jax.lax.rsqrt((style * style) @ wsq.T + 1e-8)             # (N, Cout)
    wmod = (weight[None] * style[:, None, :, None, None, None]
            * demod[:, :, None, None, None, None])                    # (N, Cout, Cin, k,k,k)
    wmod = jnp.transpose(wmod, (0, 3, 4, 5, 1, 2)).reshape(N, k, k * k, Cout, Cin)
    wmod = jnp.pad(wmod, ((0, 0), (0, 0), (0, 0), (0, 0), (0, Cin_p - Cin)))
    wmod = wmod.astype(jnp.bfloat16)

    bias_col = params["bias"].reshape(Cout, 1).astype(jnp.float32)

    # validity mask over one padded output plane (wrap / lane-pad positions -> 0)
    q2 = jnp.arange(HWp)
    mask = (((q2 // W) < Ho) & ((q2 % W) < Wo)).astype(jnp.float32).reshape(1, HWp)

    # ---- Pallas kernel 1: in-kernel-im2col conv (MXU) + fused BN partial stats ----------
    x_specs = [
        pl.BlockSpec((1, 1, Cin_p, HWin), lambda n, d, _kd=kd: (n, d + _kd, 0, 0))
        for kd in range(k)
    ]
    conv_kernel = functools.partial(_styled_conv_kernel, k=k, img_w=W, hwp=HWp)
    y, psum, psq = pl.pallas_call(
        conv_kernel,
        out_shape=(
            jax.ShapeDtypeStruct((N, Do, Cout, HWp), jnp.bfloat16),   # bf16 intermediate
            jax.ShapeDtypeStruct((N, Do, Cout, 1), jnp.float32),
            jax.ShapeDtypeStruct((N, Do, Cout, 1), jnp.float32),
        ),
        grid=(N, Do),
        in_specs=x_specs + [
            pl.BlockSpec((1, k, k * k, Cout, Cin_p), lambda n, d: (n, 0, 0, 0, 0)),
            pl.BlockSpec((Cout, 1), lambda n, d: (0, 0)),
            pl.BlockSpec((1, HWp), lambda n, d: (0, 0)),
        ],
        out_specs=(
            pl.BlockSpec((1, 1, Cout, HWp), lambda n, d: (n, d, 0, 0)),
            pl.BlockSpec((1, 1, Cout, 1), lambda n, d: (n, d, 0, 0)),
            pl.BlockSpec((1, 1, Cout, 1), lambda n, d: (n, d, 0, 0)),
        ),
        compiler_params=pltpu.CompilerParams(
            dimension_semantics=("parallel", "parallel"),
            vmem_limit_bytes=48 * 1024 * 1024),
    )(*([xq] * k), wmod, bias_col, mask)

    # ---- glue: finalize BatchNorm batch statistics (biased variance, eps=1e-5) ----------
    # TODO(synk): running_mean / running_var buffer updates (training-side state mutation)
    # are not reproduced; only the forward normalization is computed.
    count = N * Do * Ho * Wo
    mean = jnp.sum(psum, axis=(0, 1)) / count                         # (Cout, 1)
    var = jnp.maximum(jnp.sum(psq, axis=(0, 1)) / count - mean * mean, 0.0)
    rstd = jax.lax.rsqrt(var + 1e-5)
    gamma = params["bn_weight"].reshape(Cout, 1).astype(jnp.float32)
    beta = params["bn_bias"].reshape(Cout, 1).astype(jnp.float32)
    scale = gamma * rstd
    shift = beta - mean * scale

    # ---- Pallas kernel 2: normalize + LeakyReLU (large multi-plane lane-dense tiles) ----
    td2 = _largest_divisor_leq(Do, max(1, (4 << 20) // (Cout * HWp * 6)))
    o_full = pl.pallas_call(
        _bn_lrelu_kernel,
        out_shape=jax.ShapeDtypeStruct((N, Do, Cout, HWp), jnp.float32),
        grid=(N, Do // td2),
        in_specs=[
            pl.BlockSpec((1, td2, Cout, HWp), lambda n, p: (n, p, 0, 0)),
            pl.BlockSpec((Cout, 1), lambda n, p: (0, 0)),
            pl.BlockSpec((Cout, 1), lambda n, p: (0, 0)),
        ],
        out_specs=pl.BlockSpec((1, td2, Cout, HWp), lambda n, p: (n, p, 0, 0)),
        compiler_params=pltpu.CompilerParams(
            dimension_semantics=("parallel", "parallel"),
            vmem_limit_bytes=48 * 1024 * 1024),
    )(y, scale, shift)

    # final extraction (single XLA pass): drop plane padding / wrapped columns+rows and
    # restore the (N, Cout, Do, Ho, Wo) layout expected from the module.
    o = o_full[:, :, :, :HW].reshape(N, Do, Cout, H, W)[:, :, :, :Ho, :Wo]
    return jnp.transpose(o, (0, 2, 1, 3, 4))


if __name__ == "__main__":
    # ConvStyledBlock(style_size=8, in_chan=4) with defaults:
    # out_chan=4, mid_chan=4, kernel_size=3, stride=1, seq='CBA'
    N, Cin, Cout, S, D = 2, 4, 4, 8, 8

    key = jax.random.PRNGKey(0)
    kx, ks, kw, kb, ksw = jax.random.split(key, 5)

    x = jax.random.normal(kx, (N, Cin, D, D, D), dtype=jnp.float32)
    s = jax.random.normal(ks, (N, S), dtype=jnp.float32)

    fan_in = Cin * 3 * 3 * 3
    wb = 1.0 / (fan_in ** 0.5)
    sb = 1.0 / (S ** 0.5)
    params = dict(
        # ConvStyled3d parameters (deterministic, kaiming-uniform-like bounds)
        weight=jax.random.uniform(kw, (Cout, Cin, 3, 3, 3),
                                  minval=-wb, maxval=wb, dtype=jnp.float32),
        bias=jax.random.uniform(kb, (Cout,), minval=-wb, maxval=wb, dtype=jnp.float32),
        style_weight=jax.random.uniform(ksw, (Cin, S),
                                        minval=-sb, maxval=sb, dtype=jnp.float32),
        style_bias=jnp.ones((Cin,), jnp.float32),       # PyTorch init: ones
        # BatchNormStyled3d affine params (PyTorch init: weight=1, bias=0)
        bn_weight=jnp.ones((Cout,), jnp.float32),
        bn_bias=jnp.zeros((Cout,), jnp.float32),
    )

    fwd = jax.jit(functools.partial(conv_styled_block_forward, kernel_size=3))
    out = fwd(x, s, params)
    jax.block_until_ready(out)

    assert out.shape == (N, Cout, D - 2, D - 2, D - 2), out.shape
    assert out.dtype == jnp.float32
    print("KERNEL_OK")
</pallas_src>

<mosaic_0001>
module attributes {stable_mosaic.version = 11 : i64} {
  func.func @_styled_conv_kernel(%arg0: i32, %arg1: i32, %arg2: memref<1x1x8x256xbf16, #tpu.memory_space<vmem>>, %arg3: memref<1x1x8x256xbf16, #tpu.memory_space<vmem>>, %arg4: memref<1x1x8x256xbf16, #tpu.memory_space<vmem>>, %arg5: memref<1x3x9x4x8xbf16, #tpu.memory_space<vmem>>, %arg6: memref<4x1xf32, #tpu.memory_space<vmem>>, %arg7: memref<1x128xf32, #tpu.memory_space<vmem>>, %arg8: memref<1x1x4x128xbf16, #tpu.memory_space<vmem>>, %arg9: memref<1x1x4x1xf32, #tpu.memory_space<vmem>>, %arg10: memref<1x1x4x1xf32, #tpu.memory_space<vmem>>) attributes {dimension_semantics = [#tpu.dimension_semantics<parallel>, #tpu.dimension_semantics<parallel>], iteration_bounds = array<i64: 2, 6>, scalar_prefetch = 0 : i64, scratch_operands = 0 : i64, tpu.core_type = #tpu.core_type<tc>, window_params = [{transform_indices = @transform_0, window_bounds = array<i64: 1, 1, 8, 256>}, {transform_indices = @transform_1, window_bounds = array<i64: 1, 1, 8, 256>}, {transform_indices = @transform_2, window_bounds = array<i64: 1, 1, 8, 256>}, {transform_indices = @transform_3, window_bounds = array<i64: 1, 3, 9, 4, 8>}, {pipeline_mode = #tpu.pipeline_mode<synchronous>, transform_indices = @transform_4, window_bounds = array<i64: 4, 1>}, {pipeline_mode = #tpu.pipeline_mode<synchronous>, transform_indices = @transform_5, window_bounds = array<i64: 1, 128>}, {transform_indices = @transform_6, window_bounds = array<i64: 1, 1, 4, 128>}, {transform_indices = @transform_7, window_bounds = array<i64: 1, 1, 4, 1>}, {transform_indices = @transform_8, window_bounds = array<i64: 1, 1, 4, 1>}]} {
    %c0 = arith.constant 0 : index
    %c0_0 = arith.constant 0 : index
    %c0_1 = arith.constant 0 : index
    %c0_2 = arith.constant 0 : index
    %0 = vector.load %arg2[%c0, %c0_0, %c0_1, %c0_2] : memref<1x1x8x256xbf16, #tpu.memory_space<vmem>>, vector<1x1x8x256xbf16>
    %1 = vector.shape_cast %0 : vector<1x1x8x256xbf16> to vector<8x256xbf16>
    %2 = vector.extract_strided_slice %1 {offsets = [0, 0], sizes = [8, 128], strides = [1, 1]} : vector<8x256xbf16> to vector<8x128xbf16>
    %c0_3 = arith.constant 0 : index
    %c0_4 = arith.constant 0 : index
    %c0_5 = arith.constant 0 : index
    %c0_6 = arith.constant 0 : index
    %c0_7 = arith.constant 0 : index
    %3 = vector.load %arg5[%c0_3, %c0_4, %c0_5, %c0_6, %c0_7] : memref<1x3x9x4x8xbf16, #tpu.memory_space<vmem>>, vector<1x1x1x4x8xbf16>
    %4 = vector.shape_cast %3 : vector<1x1x1x4x8xbf16> to vector<4x8xbf16>
    %cst = arith.constant dense<0.000000e+00> : vector<4x128xf32>
    %5 = tpu.matmul %4, %2, %cst {dimension_numbers = #tpu.dot_dimension_numbers<[1], [0], [0], [1], [0, 0, 1, 1], [], []>} : vector<4x8xbf16>, vector<8x128xbf16>, vector<4x128xf32> -> vector<4x128xf32>
    %6 = vector.extract_strided_slice %1 {offsets = [0, 1], sizes = [8, 128], strides = [1, 1]} : vector<8x256xbf16> to vector<8x128xbf16>
    %c0_8 = arith.constant 0 : index
    %c0_9 = arith.constant 0 : index
    %c1 = arith.constant 1 : index
    %c0_10 = arith.constant 0 : index
    %c0_11 = arith.constant 0 : index
    %7 = vector.load %arg5[%c0_8, %c0_9, %c1, %c0_10, %c0_11] : memref<1x3x9x4x8xbf16, #tpu.memory_space<vmem>>, vector<1x1x1x4x8xbf16>
    %8 = vector.shape_cast %7 : vector<1x1x1x4x8xbf16> to vector<4x8xbf16>
    %cst_12 = arith.constant dense<0.000000e+00> : vector<4x128xf32>
    %9 = tpu.matmul %8, %6, %cst_12 {dimension_numbers = #tpu.dot_dimension_numbers<[1], [0], [0], [1], [0, 0, 1, 1], [], []>} : vector<4x8xbf16>, vector<8x128xbf16>, vector<4x128xf32> -> vector<4x128xf32>
    %10 = arith.addf %5, %9 : vector<4x128xf32>
    %11 = vector.extract_strided_slice %1 {offsets = [0, 2], sizes = [8, 128], strides = [1, 1]} : vector<8x256xbf16> to vector<8x128xbf16>
    %c0_13 = arith.constant 0 : index
    %c0_14 = arith.constant 0 : index
    %c2 = arith.constant 2 : index
    %c0_15 = arith.constant 0 : index
    %c0_16 = arith.constant 0 : index
    %12 = vector.load %arg5[%c0_13, %c0_14, %c2, %c0_15, %c0_16] : memref<1x3x9x4x8xbf16, #tpu.memory_space<vmem>>, vector<1x1x1x4x8xbf16>
    %13 = vector.shape_cast %12 : vector<1x1x1x4x8xbf16> to vector<4x8xbf16>
    %cst_17 = arith.constant dense<0.000000e+00> : vector<4x128xf32>
    %14 = tpu.matmul %13, %11, %cst_17 {dimension_numbers = #tpu.dot_dimension_numbers<[1], [0], [0], [1], [0, 0, 1, 1], [], []>} : vector<4x8xbf16>, vector<8x128xbf16>, vector<4x128xf32> -> vector<4x128xf32>
    %15 = arith.addf %10, %14 : vector<4x128xf32>
    %16 = vector.extract_strided_slice %1 {offsets = [0, 8], sizes = [8, 128], strides = [1, 1]} : vector<8x256xbf16> to vector<8x128xbf16>
    %c0_18 = arith.constant 0 : index
    %c0_19 = arith.constant 0 : index
    %c3 = arith.constant 3 : index
    %c0_20 = arith.constant 0 : index
    %c0_21 = arith.constant 0 : index
    %17 = vector.load %arg5[%c0_18, %c0_19, %c3, %c0_20, %c0_21] : memref<1x3x9x4x8xbf16, #tpu.memory_space<vmem>>, vector<1x1x1x4x8xbf16>
    %18 = vector.shape_cast %17 : vector<1x1x1x4x8xbf16> to vector<4x8xbf16>
    %cst_22 = arith.constant dense<0.000000e+00> : vector<4x128xf32>
    %19 = tpu.matmul %18, %16, %cst_22 {dimension_numbers = #tpu.dot_dimension_numbers<[1], [0], [0], [1], [0, 0, 1, 1], [], []>} : vector<4x8xbf16>, vector<8x128xbf16>, vector<4x128xf32> -> vector<4x128xf32>
    %20 = arith.addf %15, %19 : vector<4x128xf32>
    %21 = vector.extract_strided_slice %1 {offsets = [0, 9], sizes = [8, 128], strides = [1, 1]} : vector<8x256xbf16> to vector<8x128xbf16>
    %c0_23 = arith.constant 0 : index
    %c0_24 = arith.constant 0 : index
    %c4 = arith.constant 4 : index
    %c0_25 = arith.constant 0 : index
    %c0_26 = arith.constant 0 : index
    %22 = vector.load %arg5[%c0_23, %c0_24, %c4, %c0_25, %c0_26] : memref<1x3x9x4x8xbf16, #tpu.memory_space<vmem>>, vector<1x1x1x4x8xbf16>
    %23 = vector.shape_cast %22 : vector<1x1x1x4x8xbf16> to vector<4x8xbf16>
    %cst_27 = arith.constant dense<0.000000e+00> : vector<4x128xf32>
    %24 = tpu.matmul %23, %21, %cst_27 {dimension_numbers = #tpu.dot_dimension_numbers<[1], [0], [0], [1], [0, 0, 1, 1], [], []>} : vector<4x8xbf16>, vector<8x128xbf16>, vector<4x128xf32> -> vector<4x128xf32>
    %25 = arith.addf %20, %24 : vector<4x128xf32>
    %26 = vector.extract_strided_slice %1 {offsets = [0, 10], sizes = [8, 128], strides = [1, 1]} : vector<8x256xbf16> to vector<8x128xbf16>
    %c0_28 = arith.constant 0 : index
    %c0_29 = arith.constant 0 : index
    %c5 = arith.constant 5 : index
    %c0_30 = arith.constant 0 : index
    %c0_31 = arith.constant 0 : index
    %27 = vector.load %arg5[%c0_28, %c0_29, %c5, %c0_30, %c0_31] : memref<1x3x9x4x8xbf16, #tpu.memory_space<vmem>>, vector<1x1x1x4x8xbf16>
    %28 = vector.shape_cast %27 : vector<1x1x1x4x8xbf16> to vector<4x8xbf16>
    %cst_32 = arith.constant dense<0.000000e+00> : vector<4x128xf32>
    %29 = tpu.matmul %28, %26, %cst_32 {dimension_numbers = #tpu.dot_dimension_numbers<[1], [0], [0], [1], [0, 0, 1, 1], [], []>} : vector<4x8xbf16>, vector<8x128xbf16>, vector<4x128xf32> -> vector<4x128xf32>
    %30 = arith.addf %25, %29 : vector<4x128xf32>
    %31 = vector.extract_strided_slice %1 {offsets = [0, 16], sizes = [8, 128], strides = [1, 1]} : vector<8x256xbf16> to vector<8x128xbf16>
    %c0_33 = arith.constant 0 : index
    %c0_34 = arith.constant 0 : index
    %c6 = arith.constant 6 : index
    %c0_35 = arith.constant 0 : index
    %c0_36 = arith.constant 0 : index
    %32 = vector.load %arg5[%c0_33, %c0_34, %c6, %c0_35, %c0_36] : memref<1x3x9x4x8xbf16, #tpu.memory_space<vmem>>, vector<1x1x1x4x8xbf16>
    %33 = vector.shape_cast %32 : vector<1x1x1x4x8xbf16> to vector<4x8xbf16>
    %cst_37 = arith.constant dense<0.000000e+00> : vector<4x128xf32>
    %34 = tpu.matmul %33, %31, %cst_37 {dimension_numbers = #tpu.dot_dimension_numbers<[1], [0], [0], [1], [0, 0, 1, 1], [], []>} : vector<4x8xbf16>, vector<8x128xbf16>, vector<4x128xf32> -> vector<4x128xf32>
    %35 = arith.addf %30, %34 : vector<4x128xf32>
    %36 = vector.extract_strided_slice %1 {offsets = [0, 17], sizes = [8, 128], strides = [1, 1]} : vector<8x256xbf16> to vector<8x128xbf16>
    %c0_38 = arith.constant 0 : index
    %c0_39 = arith.constant 0 : index
    %c7 = arith.constant 7 : index
    %c0_40 = arith.constant 0 : index
    %c0_41 = arith.constant 0 : index
    %37 = vector.load %arg5[%c0_38, %c0_39, %c7, %c0_40, %c0_41] : memref<1x3x9x4x8xbf16, #tpu.memory_space<vmem>>, vector<1x1x1x4x8xbf16>
    %38 = vector.shape_cast %37 : vector<1x1x1x4x8xbf16> to vector<4x8xbf16>
    %cst_42 = arith.constant dense<0.000000e+00> : vector<4x128xf32>
    %39 = tpu.matmul %38, %36, %cst_42 {dimension_numbers = #tpu.dot_dimension_numbers<[1], [0], [0], [1], [0, 0, 1, 1], [], []>} : vector<4x8xbf16>, vector<8x128xbf16>, vector<4x128xf32> -> vector<4x128xf32>
    %40 = arith.addf %35, %39 : vector<4x128xf32>
    %41 = vector.extract_strided_slice %1 {offsets = [0, 18], sizes = [8, 128], strides = [1, 1]} : vector<8x256xbf16> to vector<8x128xbf16>
    %c0_43 = arith.constant 0 : index
    %c0_44 = arith.constant 0 : index
    %c8 = arith.constant 8 : index
    %c0_45 = arith.constant 0 : index
    %c0_46 = arith.constant 0 : index
    %42 = vector.load %arg5[%c0_43, %c0_44, %c8, %c0_45, %c0_46] : memref<1x3x9x4x8xbf16, #tpu.memory_space<vmem>>, vector<1x1x1x4x8xbf16>
    %43 = vector.shape_cast %42 : vector<1x1x1x4x8xbf16> to vector<4x8xbf16>
    %cst_47 = arith.constant dense<0.000000e+00> : vector<4x128xf32>
    %44 = tpu.matmul %43, %41, %cst_47 {dimension_numbers = #tpu.dot_dimension_numbers<[1], [0], [0], [1], [0, 0, 1, 1], [], []>} : vector<4x8xbf16>, vector<8x128xbf16>, vector<4x128xf32> -> vector<4x128xf32>
    %45 = arith.addf %40, %44 : vector<4x128xf32>
    %c0_48 = arith.constant 0 : index
    %c0_49 = arith.constant 0 : index
    %c0_50 = arith.constant 0 : index
    %c0_51 = arith.constant 0 : index
    %46 = vector.load %arg3[%c0_48, %c0_49, %c0_50, %c0_51] : memref<1x1x8x256xbf16, #tpu.memory_space<vmem>>, vector<1x1x8x256xbf16>
    %47 = vector.shape_cast %46 : vector<1x1x8x256xbf16> to vector<8x256xbf16>
    %48 = vector.extract_strided_slice %47 {offsets = [0, 0], sizes = [8, 128], strides = [1, 1]} : vector<8x256xbf16> to vector<8x128xbf16>
    %c0_52 = arith.constant 0 : index
    %c1_53 = arith.constant 1 : index
    %c0_54 = arith.constant 0 : index
    %c0_55 = arith.constant 0 : index
    %c0_56 = arith.constant 0 : index
    %49 = vector.load %arg5[%c0_52, %c1_53, %c0_54, %c0_55, %c0_56] : memref<1x3x9x4x8xbf16, #tpu.memory_space<vmem>>, vector<1x1x1x4x8xbf16>
    %50 = vector.shape_cast %49 : vector<1x1x1x4x8xbf16> to vector<4x8xbf16>
    %cst_57 = arith.constant dense<0.000000e+00> : vector<4x128xf32>
    %51 = tpu.matmul %50, %48, %cst_57 {dimension_numbers = #tpu.dot_dimension_numbers<[1], [0], [0], [1], [0, 0, 1, 1], [], []>} : vector<4x8xbf16>, vector<8x128xbf16>, vector<4x128xf32> -> vector<4x128xf32>
    %52 = arith.addf %45, %51 : vector<4x128xf32>
    %53 = vector.extract_strided_slice %47 {offsets = [0, 1], sizes = [8, 128], strides = [1, 1]} : vector<8x256xbf16> to vector<8x128xbf16>
    %c0_58 = arith.constant 0 : index
    %c1_59 = arith.constant 1 : index
    %c1_60 = arith.constant 1 : index
    %c0_61 = arith.constant 0 : index
    %c0_62 = arith.constant 0 : index
    %54 = vector.load %arg5[%c0_58, %c1_59, %c1_60, %c0_61, %c0_62] : memref<1x3x9x4x8xbf16, #tpu.memory_space<vmem>>, vector<1x1x1x4x8xbf16>
    %55 = vector.shape_cast %54 : vector<1x1x1x4x8xbf16> to vector<4x8xbf16>
    %cst_63 = arith.constant dense<0.000000e+00> : vector<4x128xf32>
    %56 = tpu.matmul %55, %53, %cst_63 {dimension_numbers = #tpu.dot_dimension_numbers<[1], [0], [0], [1], [0, 0, 1, 1], [], []>} : vector<4x8xbf16>, vector<8x128xbf16>, vector<4x128xf32> -> vector<4x128xf32>
    %57 = arith.addf %52, %56 : vector<4x128xf32>
    %58 = vector.extract_strided_slice %47 {offsets = [0, 2], sizes = [8, 128], strides = [1, 1]} : vector<8x256xbf16> to vector<8x128xbf16>
    %c0_64 = arith.constant 0 : index
    %c1_65 = arith.constant 1 : index
    %c2_66 = arith.constant 2 : index
    %c0_67 = arith.constant 0 : index
    %c0_68 = arith.constant 0 : index
    %59 = vector.load %arg5[%c0_64, %c1_65, %c2_66, %c0_67, %c0_68] : memref<1x3x9x4x8xbf16, #tpu.memory_space<vmem>>, vector<1x1x1x4x8xbf16>
    %60 = vector.shape_cast %59 : vector<1x1x1x4x8xbf16> to vector<4x8xbf16>
    %cst_69 = arith.constant dense<0.000000e+00> : vector<4x128xf32>
    %61 = tpu.matmul %60, %58, %cst_69 {dimension_numbers = #tpu.dot_dimension_numbers<[1], [0], [0], [1], [0, 0, 1, 1], [], []>} : vector<4x8xbf16>, vector<8x128xbf16>, vector<4x128xf32> -> vector<4x128xf32>
    %62 = arith.addf %57, %61 : vector<4x128xf32>
    %63 = vector.extract_strided_slice %47 {offsets = [0, 8], sizes = [8, 128], strides = [1, 1]} : vector<8x256xbf16> to vector<8x128xbf16>
    %c0_70 = arith.constant 0 : index
    %c1_71 = arith.constant 1 : index
    %c3_72 = arith.constant 3 : index
    %c0_73 = arith.constant 0 : index
    %c0_74 = arith.constant 0 : index
    %64 = vector.load %arg5[%c0_70, %c1_71, %c3_72, %c0_73, %c0_74] : memref<1x3x9x4x8xbf16, #tpu.memory_space<vmem>>, vector<1x1x1x4x8xbf16>
    %65 = vector.shape_cast %64 : vector<1x1x1x4x8xbf16> to vector<4x8xbf16>
    %cst_75 = arith.constant dense<0.000000e+00> : vector<4x128xf32>
    %66 = tpu.matmul %65, %63, %cst_75 {dimension_numbers = #tpu.dot_dimension_numbers<[1], [0], [0], [1], [0, 0, 1, 1], [], []>} : vector<4x8xbf16>, vector<8x128xbf16>, vector<4x128xf32> -> vector<4x128xf32>
    %67 = arith.addf %62, %66 : vector<4x128xf32>
    %68 = vector.extract_strided_slice %47 {offsets = [0, 9], sizes = [8, 128], strides = [1, 1]} : vector<8x256xbf16> to vector<8x128xbf16>
    %c0_76 = arith.constant 0 : index
    %c1_77 = arith.constant 1 : index
    %c4_78 = arith.constant 4 : index
    %c0_79 = arith.constant 0 : index
    %c0_80 = arith.constant 0 : index
    %69 = vector.load %arg5[%c0_76, %c1_77, %c4_78, %c0_79, %c0_80] : memref<1x3x9x4x8xbf16, #tpu.memory_space<vmem>>, vector<1x1x1x4x8xbf16>
    %70 = vector.shape_cast %69 : vector<1x1x1x4x8xbf16> to vector<4x8xbf16>
    %cst_81 = arith.constant dense<0.000000e+00> : vector<4x128xf32>
    %71 = tpu.matmul %70, %68, %cst_81 {dimension_numbers = #tpu.dot_dimension_numbers<[1], [0], [0], [1], [0, 0, 1, 1], [], []>} : vector<4x8xbf16>, vector<8x128xbf16>, vector<4x128xf32> -> vector<4x128xf32>
    %72 = arith.addf %67, %71 : vector<4x128xf32>
    %73 = vector.extract_strided_slice %47 {offsets = [0, 10], sizes = [8, 128], strides = [1, 1]} : vector<8x256xbf16> to vector<8x128xbf16>
    %c0_82 = arith.constant 0 : index
    %c1_83 = arith.constant 1 : index
    %c5_84 = arith.constant 5 : index
    %c0_85 = arith.constant 0 : index
    %c0_86 = arith.constant 0 : index
    %74 = vector.load %arg5[%c0_82, %c1_83, %c5_84, %c0_85, %c0_86] : memref<1x3x9x4x8xbf16, #tpu.memory_space<vmem>>, vector<1x1x1x4x8xbf16>
    %75 = vector.shape_cast %74 : vector<1x1x1x4x8xbf16> to vector<4x8xbf16>
    %cst_87 = arith.constant dense<0.000000e+00> : vector<4x128xf32>
    %76 = tpu.matmul %75, %73, %cst_87 {dimension_numbers = #tpu.dot_dimension_numbers<[1], [0], [0], [1], [0, 0, 1, 1], [], []>} : vector<4x8xbf16>, vector<8x128xbf16>, vector<4x128xf32> -> vector<4x128xf32>
    %77 = arith.addf %72, %76 : vector<4x128xf32>
    %78 = vector.extract_strided_slice %47 {offsets = [0, 16], sizes = [8, 128], strides = [1, 1]} : vector<8x256xbf16> to vector<8x128xbf16>
    %c0_88 = arith.constant 0 : index
    %c1_89 = arith.constant 1 : index
    %c6_90 = arith.constant 6 : index
    %c0_91 = arith.constant 0 : index
    %c0_92 = arith.constant 0 : index
    %79 = vector.load %arg5[%c0_88, %c1_89, %c6_90, %c0_91, %c0_92] : memref<1x3x9x4x8xbf16, #tpu.memory_space<vmem>>, vector<1x1x1x4x8xbf16>
    %80 = vector.shape_cast %79 : vector<1x1x1x4x8xbf16> to vector<4x8xbf16>
    %cst_93 = arith.constant dense<0.000000e+00> : vector<4x128xf32>
    %81 = tpu.matmul %80, %78, %cst_93 {dimension_numbers = #tpu.dot_dimension_numbers<[1], [0], [0], [1], [0, 0, 1, 1], [], []>} : vector<4x8xbf16>, vector<8x128xbf16>, vector<4x128xf32> -> vector<4x128xf32>
    %82 = arith.addf %77, %81 : vector<4x128xf32>
    %83 = vector.extract_strided_slice %47 {offsets = [0, 17], sizes = [8, 128], strides = [1, 1]} : vector<8x256xbf16> to vector<8x128xbf16>
    %c0_94 = arith.constant 0 : index
    %c1_95 = arith.constant 1 : index
    %c7_96 = arith.constant 7 : index
    %c0_97 = arith.constant 0 : index
    %c0_98 = arith.constant 0 : index
    %84 = vector.load %arg5[%c0_94, %c1_95, %c7_96, %c0_97, %c0_98] : memref<1x3x9x4x8xbf16, #tpu.memory_space<vmem>>, vector<1x1x1x4x8xbf16>
    %85 = vector.shape_cast %84 : vector<1x1x1x4x8xbf16> to vector<4x8xbf16>
    %cst_99 = arith.constant dense<0.000000e+00> : vector<4x128xf32>
    %86 = tpu.matmul %85, %83, %cst_99 {dimension_numbers = #tpu.dot_dimension_numbers<[1], [0], [0], [1], [0, 0, 1, 1], [], []>} : vector<4x8xbf16>, vector<8x128xbf16>, vector<4x128xf32> -> vector<4x128xf32>
    %87 = arith.addf %82, %86 : vector<4x128xf32>
    %88 = vector.extract_strided_slice %47 {offsets = [0, 18], sizes = [8, 128], strides = [1, 1]} : vector<8x256xbf16> to vector<8x128xbf16>
    %c0_100 = arith.constant 0 : index
    %c1_101 = arith.constant 1 : index
    %c8_102 = arith.constant 8 : index
    %c0_103 = arith.constant 0 : index
    %c0_104 = arith.constant 0 : index
    %89 = vector.load %arg5[%c0_100, %c1_101, %c8_102, %c0_103, %c0_104] : memref<1x3x9x4x8xbf16, #tpu.memory_space<vmem>>, vector<1x1x1x4x8xbf16>
    %90 = vector.shape_cast %89 : vector<1x1x1x4x8xbf16> to vector<4x8xbf16>
    %cst_105 = arith.constant dense<0.000000e+00> : vector<4x128xf32>
    %91 = tpu.matmul %90, %88, %cst_105 {dimension_numbers = #tpu.dot_dimension_numbers<[1], [0], [0], [1], [0, 0, 1, 1], [], []>} : vector<4x8xbf16>, vector<8x128xbf16>, vector<4x128xf32> -> vector<4x128xf32>
    %92 = arith.addf %87, %91 : vector<4x128xf32>
    %c0_106 = arith.constant 0 : index
    %c0_107 = arith.constant 0 : index
    %c0_108 = arith.constant 0 : index
    %c0_109 = arith.constant 0 : index
    %93 = vector.load %arg4[%c0_106, %c0_107, %c0_108, %c0_109] : memref<1x1x8x256xbf16, #tpu.memory_space<vmem>>, vector<1x1x8x256xbf16>
    %94 = vector.shape_cast %93 : vector<1x1x8x256xbf16> to vector<8x256xbf16>
    %95 = vector.extract_strided_slice %94 {offsets = [0, 0], sizes = [8, 128], strides = [1, 1]} : vector<8x256xbf16> to vector<8x128xbf16>
    %c0_110 = arith.constant 0 : index
    %c2_111 = arith.constant 2 : index
    %c0_112 = arith.constant 0 : index
    %c0_113 = arith.constant 0 : index
    %c0_114 = arith.constant 0 : index
    %96 = vector.load %arg5[%c0_110, %c2_111, %c0_112, %c0_113, %c0_114] : memref<1x3x9x4x8xbf16, #tpu.memory_space<vmem>>, vector<1x1x1x4x8xbf16>
    %97 = vector.shape_cast %96 : vector<1x1x1x4x8xbf16> to vector<4x8xbf16>
    %cst_115 = arith.constant dense<0.000000e+00> : vector<4x128xf32>
    %98 = tpu.matmul %97, %95, %cst_115 {dimension_numbers = #tpu.dot_dimension_numbers<[1], [0], [0], [1], [0, 0, 1, 1], [], []>} : vector<4x8xbf16>, vector<8x128xbf16>, vector<4x128xf32> -> vector<4x128xf32>
    %99 = arith.addf %92, %98 : vector<4x128xf32>
    %100 = vector.extract_strided_slice %94 {offsets = [0, 1], sizes = [8, 128], strides = [1, 1]} : vector<8x256xbf16> to vector<8x128xbf16>
    %c0_116 = arith.constant 0 : index
    %c2_117 = arith.constant 2 : index
    %c1_118 = arith.constant 1 : index
    %c0_119 = arith.constant 0 : index
    %c0_120 = arith.constant 0 : index
    %101 = vector.load %arg5[%c0_116, %c2_117, %c1_118, %c0_119, %c0_120] : memref<1x3x9x4x8xbf16, #tpu.memory_space<vmem>>, vector<1x1x1x4x8xbf16>
    %102 = vector.shape_cast %101 : vector<1x1x1x4x8xbf16> to vector<4x8xbf16>
    %cst_121 = arith.constant dense<0.000000e+00> : vector<4x128xf32>
    %103 = tpu.matmul %102, %100, %cst_121 {dimension_numbers = #tpu.dot_dimension_numbers<[1], [0], [0], [1], [0, 0, 1, 1], [], []>} : vector<4x8xbf16>, vector<8x128xbf16>, vector<4x128xf32> -> vector<4x128xf32>
    %104 = arith.addf %99, %103 : vector<4x128xf32>
    %105 = vector.extract_strided_slice %94 {offsets = [0, 2], sizes = [8, 128], strides = [1, 1]} : vector<8x256xbf16> to vector<8x128xbf16>
    %c0_122 = arith.constant 0 : index
    %c2_123 = arith.constant 2 : index
    %c2_124 = arith.constant 2 : index
    %c0_125 = arith.constant 0 : index
    %c0_126 = arith.constant 0 : index
    %106 = vector.load %arg5[%c0_122, %c2_123, %c2_124, %c0_125, %c0_126] : memref<1x3x9x4x8xbf16, #tpu.memory_space<vmem>>, vector<1x1x1x4x8xbf16>
    %107 = vector.shape_cast %106 : vector<1x1x1x4x8xbf16> to vector<4x8xbf16>
    %cst_127 = arith.constant dense<0.000000e+00> : vector<4x128xf32>
    %108 = tpu.matmul %107, %105, %cst_127 {dimension_numbers = #tpu.dot_dimension_numbers<[1], [0], [0], [1], [0, 0, 1, 1], [], []>} : vector<4x8xbf16>, vector<8x128xbf16>, vector<4x128xf32> -> vector<4x128xf32>
    %109 = arith.addf %104, %108 : vector<4x128xf32>
    %110 = vector.extract_strided_slice %94 {offsets = [0, 8], sizes = [8, 128], strides = [1, 1]} : vector<8x256xbf16> to vector<8x128xbf16>
    %c0_128 = arith.constant 0 : index
    %c2_129 = arith.constant 2 : index
    %c3_130 = arith.constant 3 : index
    %c0_131 = arith.constant 0 : index
    %c0_132 = arith.constant 0 : index
    %111 = vector.load %arg5[%c0_128, %c2_129, %c3_130, %c0_131, %c0_132] : memref<1x3x9x4x8xbf16, #tpu.memory_space<vmem>>, vector<1x1x1x4x8xbf16>
    %112 = vector.shape_cast %111 : vector<1x1x1x4x8xbf16> to vector<4x8xbf16>
    %cst_133 = arith.constant dense<0.000000e+00> : vector<4x128xf32>
    %113 = tpu.matmul %112, %110, %cst_133 {dimension_numbers = #tpu.dot_dimension_numbers<[1], [0], [0], [1], [0, 0, 1, 1], [], []>} : vector<4x8xbf16>, vector<8x128xbf16>, vector<4x128xf32> -> vector<4x128xf32>
    %114 = arith.addf %109, %113 : vector<4x128xf32>
    %115 = vector.extract_strided_slice %94 {offsets = [0, 9], sizes = [8, 128], strides = [1, 1]} : vector<8x256xbf16> to vector<8x128xbf16>
    %c0_134 = arith.constant 0 : index
    %c2_135 = arith.constant 2 : index
    %c4_136 = arith.constant 4 : index
    %c0_137 = arith.constant 0 : index
    %c0_138 = arith.constant 0 : index
    %116 = vector.load %arg5[%c0_134, %c2_135, %c4_136, %c0_137, %c0_138] : memref<1x3x9x4x8xbf16, #tpu.memory_space<vmem>>, vector<1x1x1x4x8xbf16>
    %117 = vector.shape_cast %116 : vector<1x1x1x4x8xbf16> to vector<4x8xbf16>
    %cst_139 = arith.constant dense<0.000000e+00> : vector<4x128xf32>
    %118 = tpu.matmul %117, %115, %cst_139 {dimension_numbers = #tpu.dot_dimension_numbers<[1], [0], [0], [1], [0, 0, 1, 1], [], []>} : vector<4x8xbf16>, vector<8x128xbf16>, vector<4x128xf32> -> vector<4x128xf32>
    %119 = arith.addf %114, %118 : vector<4x128xf32>
    %120 = vector.extract_strided_slice %94 {offsets = [0, 10], sizes = [8, 128], strides = [1, 1]} : vector<8x256xbf16> to vector<8x128xbf16>
    %c0_140 = arith.constant 0 : index
    %c2_141 = arith.constant 2 : index
    %c5_142 = arith.constant 5 : index
    %c0_143 = arith.constant 0 : index
    %c0_144 = arith.constant 0 : index
    %121 = vector.load %arg5[%c0_140, %c2_141, %c5_142, %c0_143, %c0_144] : memref<1x3x9x4x8xbf16, #tpu.memory_space<vmem>>, vector<1x1x1x4x8xbf16>
    %122 = vector.shape_cast %121 : vector<1x1x1x4x8xbf16> to vector<4x8xbf16>
    %cst_145 = arith.constant dense<0.000000e+00> : vector<4x128xf32>
    %123 = tpu.matmul %122, %120, %cst_145 {dimension_numbers = #tpu.dot_dimension_numbers<[1], [0], [0], [1], [0, 0, 1, 1], [], []>} : vector<4x8xbf16>, vector<8x128xbf16>, vector<4x128xf32> -> vector<4x128xf32>
    %124 = arith.addf %119, %123 : vector<4x128xf32>
    %125 = vector.extract_strided_slice %94 {offsets = [0, 16], sizes = [8, 128], strides = [1, 1]} : vector<8x256xbf16> to vector<8x128xbf16>
    %c0_146 = arith.constant 0 : index
    %c2_147 = arith.constant 2 : index
    %c6_148 = arith.constant 6 : index
    %c0_149 = arith.constant 0 : index
    %c0_150 = arith.constant 0 : index
    %126 = vector.load %arg5[%c0_146, %c2_147, %c6_148, %c0_149, %c0_150] : memref<1x3x9x4x8xbf16, #tpu.memory_space<vmem>>, vector<1x1x1x4x8xbf16>
    %127 = vector.shape_cast %126 : vector<1x1x1x4x8xbf16> to vector<4x8xbf16>
    %cst_151 = arith.constant dense<0.000000e+00> : vector<4x128xf32>
    %128 = tpu.matmul %127, %125, %cst_151 {dimension_numbers = #tpu.dot_dimension_numbers<[1], [0], [0], [1], [0, 0, 1, 1], [], []>} : vector<4x8xbf16>, vector<8x128xbf16>, vector<4x128xf32> -> vector<4x128xf32>
    %129 = arith.addf %124, %128 : vector<4x128xf32>
    %130 = vector.extract_strided_slice %94 {offsets = [0, 17], sizes = [8, 128], strides = [1, 1]} : vector<8x256xbf16> to vector<8x128xbf16>
    %c0_152 = arith.constant 0 : index
    %c2_153 = arith.constant 2 : index
    %c7_154 = arith.constant 7 : index
    %c0_155 = arith.constant 0 : index
    %c0_156 = arith.constant 0 : index
    %131 = vector.load %arg5[%c0_152, %c2_153, %c7_154, %c0_155, %c0_156] : memref<1x3x9x4x8xbf16, #tpu.memory_space<vmem>>, vector<1x1x1x4x8xbf16>
    %132 = vector.shape_cast %131 : vector<1x1x1x4x8xbf16> to vector<4x8xbf16>
    %cst_157 = arith.constant dense<0.000000e+00> : vector<4x128xf32>
    %133 = tpu.matmul %132, %130, %cst_157 {dimension_numbers = #tpu.dot_dimension_numbers<[1], [0], [0], [1], [0, 0, 1, 1], [], []>} : vector<4x8xbf16>, vector<8x128xbf16>, vector<4x128xf32> -> vector<4x128xf32>
    %134 = arith.addf %129, %133 : vector<4x128xf32>
    %135 = vector.extract_strided_slice %94 {offsets = [0, 18], sizes = [8, 128], strides = [1, 1]} : vector<8x256xbf16> to vector<8x128xbf16>
    %c0_158 = arith.constant 0 : index
    %c2_159 = arith.constant 2 : index
    %c8_160 = arith.constant 8 : index
    %c0_161 = arith.constant 0 : index
    %c0_162 = arith.constant 0 : index
    %136 = vector.load %arg5[%c0_158, %c2_159, %c8_160, %c0_161, %c0_162] : memref<1x3x9x4x8xbf16, #tpu.memory_space<vmem>>, vector<1x1x1x4x8xbf16>
    %137 = vector.shape_cast %136 : vector<1x1x1x4x8xbf16> to vector<4x8xbf16>
    %cst_163 = arith.constant dense<0.000000e+00> : vector<4x128xf32>
    %138 = tpu.matmul %137, %135, %cst_163 {dimension_numbers = #tpu.dot_dimension_numbers<[1], [0], [0], [1], [0, 0, 1, 1], [], []>} : vector<4x8xbf16>, vector<8x128xbf16>, vector<4x128xf32> -> vector<4x128xf32>
    %139 = arith.addf %134, %138 : vector<4x128xf32>
    %c0_164 = arith.constant 0 : index
    %c0_165 = arith.constant 0 : index
    %140 = vector.load %arg6[%c0_164, %c0_165] : memref<4x1xf32, #tpu.memory_space<vmem>>, vector<4x1xf32>
    %141 = vector.broadcast %140 : vector<4x1xf32> to vector<4x128xf32>
    %142 = arith.addf %139, %141 : vector<4x128xf32>
    %c0_166 = arith.constant 0 : index
    %c0_167 = arith.constant 0 : index
    %143 = vector.load %arg7[%c0_166, %c0_167] : memref<1x128xf32, #tpu.memory_space<vmem>>, vector<1x128xf32>
    %144 = vector.broadcast %143 : vector<1x128xf32> to vector<4x128xf32>
    %145 = arith.mulf %142, %144 : vector<4x128xf32>
    %146 = arith.truncf %145 : vector<4x128xf32> to vector<4x128xbf16>
    %c0_168 = arith.constant 0 : index
    %c0_169 = arith.constant 0 : index
    %c0_170 = arith.constant 0 : index
    %c0_171 = arith.constant 0 : index
    %147 = vector.load %arg8[%c0_168, %c0_169, %c0_170, %c0_171] : memref<1x1x4x128xbf16, #tpu.memory_space<vmem>>, vector<1x1x4x128xbf16>
    %148 = vector.shape_cast %147 : vector<1x1x4x128xbf16> to vector<4x128xbf16>
    %149 = vector.shape_cast %146 : vector<4x128xbf16> to vector<1x1x4x128xbf16>
    tpu.vector_store %arg8[%c0_168, %c0_169, %c0_170, %c0_171], %149 {strides = array<i32>} : memref<1x1x4x128xbf16, #tpu.memory_space<vmem>>, vector<1x1x4x128xbf16>,
    %cst_172 = arith.constant dense<0.000000e+00> : vector<4xf32>
    %150 = vector.multi_reduction <add>, %145, %cst_172 [1] : vector<4x128xf32> to vector<4xf32>
    %151 = vector.shape_cast %150 : vector<4xf32> to vector<4x1xf32>
    %c0_173 = arith.constant 0 : index
    %c0_174 = arith.constant 0 : index
    %c0_175 = arith.constant 0 : index
    %c0_176 = arith.constant 0 : index
    %152 = vector.load %arg9[%c0_173, %c0_174, %c0_175, %c0_176] : memref<1x1x4x1xf32, #tpu.memory_space<vmem>>, vector<1x1x4x1xf32>
    %153 = vector.shape_cast %152 : vector<1x1x4x1xf32> to vector<4x1xf32>
    %154 = vector.shape_cast %151 : vector<4x1xf32> to vector<1x1x4x1xf32>
    tpu.vector_store %arg9[%c0_173, %c0_174, %c0_175, %c0_176], %154 {strides = array<i32>} : memref<1x1x4x1xf32, #tpu.memory_space<vmem>>, vector<1x1x4x1xf32>,
    %155 = arith.mulf %145, %145 : vector<4x128xf32>
    %cst_177 = arith.constant dense<0.000000e+00> : vector<4xf32>
    %156 = vector.multi_reduction <add>, %155, %cst_177 [1] : vector<4x128xf32> to vector<4xf32>
    %157 = vector.shape_cast %156 : vector<4xf32> to vector<4x1xf32>
    %c0_178 = arith.constant 0 : index
    %c0_179 = arith.constant 0 : index
    %c0_180 = arith.constant 0 : index
    %c0_181 = arith.constant 0 : index
    %158 = vector.load %arg10[%c0_178, %c0_179, %c0_180, %c0_181] : memref<1x1x4x1xf32, #tpu.memory_space<vmem>>, vector<1x1x4x1xf32>
    %159 = vector.shape_cast %158 : vector<1x1x4x1xf32> to vector<4x1xf32>
    %160 = vector.shape_cast %157 : vector<4x1xf32> to vector<1x1x4x1xf32>
    tpu.vector_store %arg10[%c0_178, %c0_179, %c0_180, %c0_181], %160 {strides = array<i32>} : memref<1x1x4x1xf32, #tpu.memory_space<vmem>>, vector<1x1x4x1xf32>,
    return
  }
  func.func @transform_0(%arg0: i32, %arg1: i32) -> (i32, i32, i32, i32) {
    %c0_i32 = arith.constant 0 : i32
    %0 = arith.addi %arg1, %c0_i32 : i32
    %c0_i32_0 = arith.constant 0 : i32
    %c0_i32_1 = arith.constant 0 : i32
    %c0_i32_2 = arith.constant 0 : i32
    return %arg0, %0, %c0_i32_0, %c0_i32_1 : i32, i32, i32, i32
  }
  func.func @transform_1(%arg0: i32, %arg1: i32) -> (i32, i32, i32, i32) {
    %c1_i32 = arith.constant 1 : i32
    %0 = arith.addi %arg1, %c1_i32 : i32
    %c0_i32 = arith.constant 0 : i32
    %c0_i32_0 = arith.constant 0 : i32
    %c0_i32_1 = arith.constant 0 : i32
    return %arg0, %0, %c0_i32, %c0_i32_0 : i32, i32, i32, i32
  }
  func.func @transform_2(%arg0: i32, %arg1: i32) -> (i32, i32, i32, i32) {
    %c2_i32 = arith.constant 2 : i32
    %0 = arith.addi %arg1, %c2_i32 : i32
    %c0_i32 = arith.constant 0 : i32
    %c0_i32_0 = arith.constant 0 : i32
    %c0_i32_1 = arith.constant 0 : i32
    return %arg0, %0, %c0_i32, %c0_i32_0 : i32, i32, i32, i32
  }
  func.func @transform_3(%arg0: i32, %arg1: i32) -> (i32, i32, i32, i32, i32) {
    %c0_i32 = arith.constant 0 : i32
    %c0_i32_0 = arith.constant 0 : i32
    %c0_i32_1 = arith.constant 0 : i32
    %c0_i32_2 = arith.constant 0 : i32
    %c0_i32_3 = arith.constant 0 : i32
    return %arg0, %c0_i32, %c0_i32_0, %c0_i32_1, %c0_i32_2 : i32, i32, i32, i32, i32
  }
  func.func @transform_4(%arg0: i32, %arg1: i32) -> (i32, i32) {
    %c0_i32 = arith.constant 0 : i32
    %c0_i32_0 = arith.constant 0 : i32
    %c0_i32_1 = arith.constant 0 : i32
    return %c0_i32, %c0_i32_0 : i32, i32
  }
  func.func @transform_5(%arg0: i32, %arg1: i32) -> (i32, i32) {
    %c0_i32 = arith.constant 0 : i32
    %c0_i32_0 = arith.constant 0 : i32
    %c0_i32_1 = arith.constant 0 : i32
    return %c0_i32, %c0_i32_0 : i32, i32
  }
  func.func @transform_6(%arg0: i32, %arg1: i32) -> (i32, i32, i32, i32) {
    %c0_i32 = arith.constant 0 : i32
    %c0_i32_0 = arith.constant 0 : i32
    %c0_i32_1 = arith.constant 0 : i32
    return %arg0, %arg1, %c0_i32, %c0_i32_0 : i32, i32, i32, i32
  }
  func.func @transform_7(%arg0: i32, %arg1: i32) -> (i32, i32, i32, i32) {
    %c0_i32 = arith.constant 0 : i32
    %c0_i32_0 = arith.constant 0 : i32
    %c0_i32_1 = arith.constant 0 : i32
    return %arg0, %arg1, %c0_i32, %c0_i32_0 : i32, i32, i32, i32
  }
  func.func @transform_8(%arg0: i32, %arg1: i32) -> (i32, i32, i32, i32) {
    %c0_i32 = arith.constant 0 : i32
    %c0_i32_0 = arith.constant 0 : i32
    %c0_i32_1 = arith.constant 0 : i32
    return %arg0, %arg1, %c0_i32, %c0_i32_0 : i32, i32, i32, i32
  }
}

module attributes {stable_mosaic.version = 11 : i64} {
  func.func @_bn_lrelu_kernel(%arg0: i32, %arg1: i32, %arg2: memref<1x6x4x128xbf16, #tpu.memory_space<vmem>>, %arg3: memref<4x1xf32, #tpu.memory_space<vmem>>, %arg4: memref<4x1xf32, #tpu.memory_space<vmem>>, %arg5: memref<1x6x4x128xf32, #tpu.memory_space<vmem>>) attributes {dimension_semantics = [#tpu.dimension_semantics<parallel>, #tpu.dimension_semantics<parallel>], iteration_bounds = array<i64: 2, 1>, scalar_prefetch = 0 : i64, scratch_operands = 0 : i64, tpu.core_type = #tpu.core_type<tc>, window_params = [{transform_indices = @transform_0, window_bounds = array<i64: 1, 6, 4, 128>}, {pipeline_mode = #tpu.pipeline_mode<synchronous>, transform_indices = @transform_1, window_bounds = array<i64: 4, 1>}, {pipeline_mode = #tpu.pipeline_mode<synchronous>, transform_indices = @transform_2, window_bounds = array<i64: 4, 1>}, {transform_indices = @transform_3, window_bounds = array<i64: 1, 6, 4, 128>}]} {
    %c0 = arith.constant 0 : index
    %c0_0 = arith.constant 0 : index
    %c0_1 = arith.constant 0 : index
    %c0_2 = arith.constant 0 : index
    %0 = vector.load %arg2[%c0, %c0_0, %c0_1, %c0_2] : memref<1x6x4x128xbf16, #tpu.memory_space<vmem>>, vector<1x6x4x128xbf16>
    %1 = vector.shape_cast %0 : vector<1x6x4x128xbf16> to vector<6x4x128xbf16>
    %2 = arith.extf %1 : vector<6x4x128xbf16> to vector<6x4x128xf32>
    %c0_3 = arith.constant 0 : index
    %c0_4 = arith.constant 0 : index
    %3 = vector.load %arg3[%c0_3, %c0_4] : memref<4x1xf32, #tpu.memory_space<vmem>>, vector<4x1xf32>
    %4 = vector.shape_cast %3 : vector<4x1xf32> to vector<1x4x1xf32>
    %5 = vector.broadcast %4 : vector<1x4x1xf32> to vector<6x4x128xf32>
    %6 = arith.mulf %2, %5 : vector<6x4x128xf32>
    %c0_5 = arith.constant 0 : index
    %c0_6 = arith.constant 0 : index
    %7 = vector.load %arg4[%c0_5, %c0_6] : memref<4x1xf32, #tpu.memory_space<vmem>>, vector<4x1xf32>
    %8 = vector.shape_cast %7 : vector<4x1xf32> to vector<1x4x1xf32>
    %9 = vector.broadcast %8 : vector<1x4x1xf32> to vector<6x4x128xf32>
    %10 = arith.addf %6, %9 : vector<6x4x128xf32>
    %cst = arith.constant 0.000000e+00 : f32
    %11 = vector.broadcast %cst : f32 to vector<6x4x128xf32>
    %12 = arith.cmpf oge, %10, %11 : vector<6x4x128xf32>
    %cst_7 = arith.constant 0.00999999977 : f32
    %13 = vector.broadcast %cst_7 : f32 to vector<6x4x128xf32>
    %14 = arith.mulf %13, %10 : vector<6x4x128xf32>
    %15 = arith.select %12, %10, %14 : vector<6x4x128xi1>, vector<6x4x128xf32>
    %c0_8 = arith.constant 0 : index
    %c0_9 = arith.constant 0 : index
    %c0_10 = arith.constant 0 : index
    %c0_11 = arith.constant 0 : index
    %16 = vector.load %arg5[%c0_8, %c0_9, %c0_10, %c0_11] : memref<1x6x4x128xf32, #tpu.memory_space<vmem>>, vector<1x6x4x128xf32>
    %17 = vector.shape_cast %16 : vector<1x6x4x128xf32> to vector<6x4x128xf32>
    %18 = vector.shape_cast %15 : vector<6x4x128xf32> to vector<1x6x4x128xf32>
    tpu.vector_store %arg5[%c0_8, %c0_9, %c0_10, %c0_11], %18 {strides = array<i32>} : memref<1x6x4x128xf32, #tpu.memory_space<vmem>>, vector<1x6x4x128xf32>,
    return
  }
  func.func @transform_0(%arg0: i32, %arg1: i32) -> (i32, i32, i32, i32) {
    %c0_i32 = arith.constant 0 : i32
    %c0_i32_0 = arith.constant 0 : i32
    %c0_i32_1 = arith.constant 0 : i32
    return %arg0, %arg1, %c0_i32, %c0_i32_0 : i32, i32, i32, i32
  }
  func.func @transform_1(%arg0: i32, %arg1: i32) -> (i32, i32) {
    %c0_i32 = arith.constant 0 : i32
    %c0_i32_0 = arith.constant 0 : i32
    %c0_i32_1 = arith.constant 0 : i32
    return %c0_i32, %c0_i32_0 : i32, i32
  }
  func.func @transform_2(%arg0: i32, %arg1: i32) -> (i32, i32) {
    %c0_i32 = arith.constant 0 : i32
    %c0_i32_0 = arith.constant 0 : i32
    %c0_i32_1 = arith.constant 0 : i32
    return %c0_i32, %c0_i32_0 : i32, i32
  }
  func.func @transform_3(%arg0: i32, %arg1: i32) -> (i32, i32, i32, i32) {
    %c0_i32 = arith.constant 0 : i32
    %c0_i32_0 = arith.constant 0 : i32
    %c0_i32_1 = arith.constant 0 : i32
    return %arg0, %arg1, %c0_i32, %c0_i32_0 : i32, i32, i32, i32
  }
}

</mosaic_0001>

<bundles_post_ra>
// kernel: conv_styled_block_forward.3
= control target key start
LH: loop header
LB: loop body
LE: loop exit
PB: predicated region body
PF: predicated region fallthrough
CT: control target
= control target key end

     0   :  { %s439_s12 = smov 0   ;;  %s441_s13 = smov 0   ;;  %s482_s0 = inlined_call_operand.vmem [shape: bf16[2,6,4,128], index: 0, kind: input, shape index: {}]   ;;  %s483_s1 = inlined_call_operand.vmem [shape: f32[4,1], index: 1, kind: input, shape index: {}]   ;;  %s484_s2 = inlined_call_operand.vmem [shape: f32[4,1], index: 2, kind: input, shape index: {}]   ;;  %s485_s3 = inlined_call_operand.vmem [shape: f32[2,6,4,128], index: 3, kind: output, shape index: {}]  }
   0x1   :  { %s443_s14 = smov 0  }
   0x2 LB: > { %s25_s15 = sadd.s32 1, %s412_s13  ;;  %p361_p0 = scmp.ge.s32.totalorder %s416_s14, 1  ;;  %s416_s14 = sphi %s443_s14, %s13_s14   ;;  %s412_s13 = sphi %s441_s13, %s487_s13   ;;  %s408_s12 = sphi %s439_s12, %s486_s12  }
   0x3   : > { %p27_p1 = scmp.ge.s32.totalorder %s25_s15, 2  ;;  %p158_p2 = scmp.lt.s32.totalorder %s416_s14, 3 }
   0x5   : > { %s489_s15 = smov (%p27_p1, %s25_s15), 0  ;;  %p159_p3 = pnand %p361_p0, %p158_p2 }
   0x6   : > { %p191_p4 = scmp.lt.s32.totalorder (!%p159_p3), %s408_s12, 1 }
   0x7   : > { %162 = sbr.rel (%p159_p3) target bundleno = 149 (0x95), region = 32 }
   0xc   : > { %v222_v0 = vld [vmem:[%s483_s1] sm:$0xf]  ;;  %v418_v1 = vmov 0   ;;  %s491_s12 = smov (!%p191_p4, %s408_s12), 1 }
   0xd   : > { %393 = vset.pattern.permute.xlu0 %v418_v1  ;;  %v234_v2 = vld [vmem:[%s484_s2] sm:$0xf]  ;;  %s366_s20 = smul.u32 12, %s491_s12 }
   0xe   : > { %225 = vperm.xlu0 %393, %v222_v0   ;;  %s367_s24 = smul.u32 24, %s491_s12 }
   0xf   : > { %s198_s23 = scalar_lea.vmem %s482_s0, %s366_s20 }
  0x10   : > { %v210_v3 = vld [vmem:[%s198_s23] sm:$0x3]  ;;  %v211_v5 = vld [vmem:[%s198_s23 + $0x2] sm:$0x3]  ;;  %v212_v6 = vld [vmem:[%s198_s23 + $0x4] sm:$0x3]  ;;  %s208_s27 = scalar_lea.vmem %s485_s3, %s367_s24 }
  0x11   : > { %v213_v7 = vld [vmem:[%s198_s23 + $0x6] sm:$0x3]  ;;  %v214_v8 = vld [vmem:[%s198_s23 + $0x8] sm:$0x3]  ;;  %v215_v9 = vld [vmem:[%s198_s23 + $0xa] sm:$0x3]  ;;  %v216_v10 = vunpack.c.l.bf16 %v210_v3  ;;  %v217_v11 = vunpack.c.l.bf16 %v211_v5  ;;  %v218_v12 = vunpack.c.l.bf16 %v212_v6 }
  0x12   : > { %v219_v13 = vunpack.c.l.bf16 %v213_v7  ;;  %v220_v14 = vunpack.c.l.bf16 %v214_v8  ;;  %v221_v15 = vunpack.c.l.bf16 %v215_v9 }
  0x16   : > { %237 = vperm.xlu0 %393, %v234_v2  }
  0x80   : > { %v226_v4 = vpop.permute.xlu0 %225 }
  0x81   : > { %v228_v16 = vmul.f32 %v226_v4, %v216_v10  ;;  %v229_v17 = vmul.f32 %v226_v4, %v217_v11  ;;  %v230_v18 = vmul.f32 %v226_v4, %v218_v12  ;;  %v231_v19 = vmul.f32 %v226_v4, %v219_v13 }
  0x82   : > { %v232_v21 = vmul.f32 %v226_v4, %v220_v14  ;;  %v233_v22 = vmul.f32 %v226_v4, %v221_v15 }
  0x88   : > { %v238_v20 = vpop.permute.xlu0 %237 }
  0x89   : > { %v240_v23 = vadd.f32 %v238_v20, %v228_v16  ;;  %v241_v24 = vadd.f32 %v238_v20, %v229_v17  ;;  %v242_v25 = vadd.f32 %v238_v20, %v230_v18  ;;  %v243_v26 = vadd.f32 %v238_v20, %v231_v19 }
  0x8a   : > { %v244_v27 = vadd.f32 %v238_v20, %v232_v21  ;;  %v245_v28 = vadd.f32 %v238_v20, %v233_v22 }
  0x8b   : > { %vm246_vm0 = vcmp.ge.f32.partialorder %v240_v23, 0.0  ;;  %vm247_vm1 = vcmp.ge.f32.partialorder %v241_v24, 0.0  ;;  %vm248_vm2 = vcmp.ge.f32.partialorder %v242_v25, 0.0  ;;  %vm249_vm3 = vcmp.ge.f32.partialorder %v243_v26, 0.0 }
  0x8c   : > { %vm250_vm4 = vcmp.ge.f32.partialorder %v244_v27, 0.0  ;;  %v252_v29 = vmul.f32 0.01, %v240_v23  ;;  %v253_v30 = vmul.f32 0.01, %v241_v24  ;;  %vm251_vm5 = vcmp.ge.f32.partialorder %v245_v28, 0.0 }
  0x8d   : > { %v254_v31 = vmul.f32 0.01, %v242_v25  ;;  %v255_v32 = vmul.f32 0.01, %v243_v26  ;;  %v256_v33 = vmul.f32 0.01, %v244_v27 }
  0x8e   : > { %v257_v34 = vmul.f32 0.01, %v245_v28  ;;  %v258_v35 = vsel %vm246_vm0, %v240_v23, %v252_v29  ;;  %v259_v36 = vsel %vm247_vm1, %v241_v24, %v253_v30 }
  0x8f   : > { %v260_v37 = vsel %vm248_vm2, %v242_v25, %v254_v31  ;;  %v261_v38 = vsel %vm249_vm3, %v243_v26, %v255_v32  ;;  %264 = vst [vmem:[%s208_s27] sm:$0xf] %v258_v35  ;;  %v262_v39 = vsel %vm250_vm4, %v244_v27, %v256_v33 }
  0x90   : > { %265 = vst [vmem:[%s208_s27 + $0x4] sm:$0xf] %v259_v36  ;;  %v263_v40 = vsel %vm251_vm5, %v245_v28, %v257_v34 }
  0x91   : > { %266 = vst [vmem:[%s208_s27 + $0x8] sm:$0xf] %v260_v37 }
  0x92   : > { %267 = vst [vmem:[%s208_s27 + $0xc] sm:$0xf] %v261_v38 }
  0x93   : > { %268 = vst [vmem:[%s208_s27 + $0x10] sm:$0xf] %v262_v39 }
  0x94   : > { %269 = vst [vmem:[%s208_s27 + $0x14] sm:$0xf] %v263_v40 }
  0x95 PF: > { %s13_s14 = sadd.s32 1, %s416_s14   ;;  %s486_s12 = smov %s412_s13 }
  0x96   : > { %p10_p5 = scmp.ge.s32.totalorder %s13_s14, 4   ;;  %s487_s13 = smov %s489_s15 }
  0x98   :  { %12 = sbr.rel (!%p10_p5) target bundleno = 2 (0x2), region = 62 }

// kernel: conv_styled_block_forward.2
= control target key start
LH: loop header
LB: loop body
LE: loop exit
PB: predicated region body
PF: predicated region fallthrough
CT: control target
= control target key end

     0   :  { %s1704_s27 = smov 0   ;;  %s1706_s28 = smov 0   ;;  %s1966_s0 = inlined_call_operand.vmem [shape: bf16[2,8,8,256], index: 0, kind: input, shape index: {}, may-alias: {0,1,2}]   ;;  %s1967_s1 = inlined_call_operand.vmem [shape: bf16[2,8,8,256], index: 1, kind: input, shape index: {}, may-alias: {0,1,2}]   ;;  %s1968_s2 = inlined_call_operand.vmem [shape: bf16[2,8,8,256], index: 2, kind: input, shape index: {}, may-alias: {0,1,2}]   ;;  %s1969_s3 = inlined_call_operand.vmem [shape: bf16[2,3,9,4,8], index: 3, kind: input, shape index: {}]   ;;  %s1970_s4 = inlined_call_operand.vmem [shape: f32[4,1], index: 4, kind: input, shape index: {}]   ;;  %s1971_s5 = inlined_call_operand.vmem [shape: f32[1,128], index: 5, kind: input, shape index: {}]   ;;  %s1972_s6 = inlined_call_operand.vmem [shape: bf16[2,6,4,128], index: 6, kind: output, shape index: {0}]   ;;  %s1973_s7 = inlined_call_operand.vmem [shape: f32[2,6,4,1], index: 7, kind: output, shape index: {1}]   ;;  %s1974_s8 = inlined_call_operand.vmem [shape: f32[2,6,4,1], index: 8, kind: output, shape index: {2}]  }
   0x1   :  { %s1708_s29 = smov 0   ;;  %s1710_s30 = smov 0  }
   0x2   :  { %s1712_s9 = smov 0  }
   0x3 LB: > { %s28_s10 = sadd.s32 1, %s1640_s29  ;;  %s31_s11 = sadd.s32 1, %s1644_s30  ;;  %s1648_s9 = sphi %s1712_s9, %s19_s9   ;;  %s1644_s30 = sphi %s1710_s30, %s1981_s30   ;;  %s1640_s29 = sphi %s1708_s29, %s1980_s29   ;;  %s1636_s28 = sphi %s1706_s28, %s1979_s28   ;;  %s1632_s27 = sphi %s1704_s27, %s1978_s27  }
   0x4   : > { %p29_p0 = scmp.ge.s32.totalorder %s28_s10, 6  ;;  %p1488_p1 = scmp.ge.s32.totalorder %s1648_s9, 1 }
   0x5   : > { %p341_p2 = scmp.lt.s32.totalorder %s1648_s9, 13 }
   0x6   : > { %s1983_s10 = smov (%p29_p0, %s28_s10), 0  ;;  %s1985_s11 = smov (!%p29_p0, %s31_s11), %s1644_s30 }
   0x7   : > { %p342_p3 = pnand %p1488_p1, %p341_p2  ;;  %p33_p4 = scmp.ge.s32.totalorder %s1985_s11, 2 }
   0x8   : > { %p423_p5 = scmp.lt.s32.totalorder (!%p342_p3), %s1636_s28, 1  ;;  %p425_p6 = scmp.lt.s32.totalorder (!%p342_p3), %s1632_s27, 7 }
   0x9   : > { %s1987_s11 = smov (%p33_p4, %s1985_s11), 0  ;;  %345 = sbr.rel (%p342_p3) target bundleno = 522 (0x20a), region = 44 }
   0xa   : > { %s1650_s20 = smov (!%p342_p3), 127   ;;  %s1975_s21 = smov (!%p342_p3), 126  }
   0xb   : > { %s1652_s22 = smov (!%p342_p3), 120   ;;  %s432_s23 = sadd.s32 (!%p342_p3), 1, %s1632_s27 }
   0xc   : > { %p435_p7 = scmp.lt.s32.totalorder (!%p342_p3), %s432_s23, 7  ;;  %s1653_s25 = smov (!%p342_p3), 112  }
   0xd   : > { %s1654_s26 = smov (!%p342_p3), 119   ;;  %s1655_s18 = smov (!%p342_p3), 118  }
   0xe   : > { %s1989_s28 = smov (!%p423_p5, %s1636_s28), 1  ;;  %s1991_s23 = smov (!%p435_p7, %s432_s23), 7  ;;  %vm503_vm0 = vcmask 1043456   ;;  %vm573_vm1 = vcmask 982016   ;;  %vm499_vm2 = vcmask 64512   ;;  %vm497_vm3 = vcmask 1039360  }
   0xf   : > { %s426_s12 = scalar_select %p425_p6, %s1632_s27, 7  ;;  %vm545_vm4 = vcmask 1031168   ;;  %vm657_vm5 = vcmask 916480   ;;  %vm601_vm6 = vcmask 973824   ;;  %vm629_vm7 = vcmask 965632  }
  0x10   : > { %s1741_s13 = sshll.u32 %s1989_s28, 4  ;;  %s1492_s24 = sshll.u32 %s1991_s23, 1  ;;  %vm685_vm8 = vcmask 908288   ;;  %vm713_vm9 = vcmask 900096   ;;  %vm1240_vm10 = vcmask 3072  }
  0x11   : > { %s1489_s14 = sshll.u32 %s426_s12, 1  ;;  %s439_s12 = sadd.s32 %s1492_s24, %s1741_s13 }
  0x12   : > { %s429_s15 = sadd.s32 %s1741_s13, %s1489_s14  ;;  %s1494_s14 = sshll.u32 %s439_s12, 2 }
  0x13   : > { %s1491_s16 = sshll.u32 %s429_s15, 2  ;;  %s441_s17 = scalar_lea.vmem %s1967_s1, %s1494_s14 }
  0x14   : > { %s431_s19 = scalar_lea.vmem %s1966_s0, %s1491_s16  ;;  %v1768_v5 = vld [vmem:[%s441_s17] sm:$0xff]  ;;  %s1657_s23 = smov 110  }
  0x15   : > { %v1747_v0 = vld [vmem:[%s431_s19] sm:$0xff]  ;;  %v761_v6 = vunpack.c.l.b16 %v1768_v5  ;;  %s1656_s19 = smov 111   ;;  %v762_v8 = vunpack.c.h.b16 %v1768_v5  ;;  %s443_s24 = sadd.s32 2, %s1632_s27  ;;  %v742_v44 = vsel %vm503_vm0, %v1768_v5, 0 }
  0x16   : > { %v489_v1 = vunpack.c.l.b16 %v1747_v0  ;;  %v490_v3 = vunpack.c.h.b16 %v1747_v0  ;;  %p446_p8 = scmp.lt.s32.totalorder %s443_s24, 7  ;;  %v524_v16 = vsel %vm503_vm0, %v1747_v0, 0  ;;  %p461_p9 = scmp.lt.s32.totalorder %s1632_s27, 5 }
  0x17   : > { %v763_v7 = vpack.c.b16 %v761_v6, %v761_v6  ;;  %v764_v9 = vpack.c.b16 %v762_v8, %v762_v8  ;;  %533 = vmatpush.bf16.msra.mxu1 %v524_v16 }
  0x18   : > { %v491_v2 = vpack.c.b16 %v489_v1, %v489_v1  ;;  %v492_v4 = vpack.c.b16 %v490_v3, %v490_v3  ;;  %s1993_s24 = smov (!%p446_p8, %s443_s24), 7  ;;  %s1995_s27 = smov (!%p461_p9, %s1632_s27), 5 }
  0x19   : > { %s1495_s12 = sshll.u32 %s1993_s24, 1 }
  0x1a   : > { %493 = vrot.lane.b32.xlu1 %v491_v2, %s1650_s20  ;;  %541 = vrot.lane.b32.xlu0 %v491_v2, %s1975_s21  ;;  %s450_s14 = sadd.s32 %s1495_s12, %s1741_s13  ;;  %s1557_s13 = smul.u32 54, %s1989_s28 }
  0x1b   : > { %569 = vrot.lane.b32.xlu2 %v491_v2, %s1652_s22  ;;  %s1497_s15 = sshll.u32 %s450_s14, 2  ;;  %s1977_s14 = smov 126  }
  0x1c   : > { %s1811_s12 = scalar_lea.vmem %s1969_s3, %s1557_s13 }
  0x1d   : > { %v485_v17 = vld [vmem:[%s1811_s12] sm:$0x3]  ;;  %v1507_v21 = vld [vmem:[%s1811_s12 + $0x6] sm:$0x3]  ;;  %v1502_v33 = vld [vmem:[%s1811_s12 + $0x2] sm:$0x3] }
  0x1e   : > { %1504 = vmatmul.msk.bf16.vlgmr.msra.gmra.mxu1 %vm499_vm2, %v485_v17  ;;  %v1505_v34 = vld [vmem:[%s1811_s12 + $0x4] sm:$0x3]  ;;  %v1509_v47 = vld [vmem:[%s1811_s12 + $0x8] sm:$0x3]  ;;  %v1513_v48 = vld [vmem:[%s1811_s12 + $0xc] sm:$0x3] }
  0x1f   : > { %v1511_v50 = vld [vmem:[%s1811_s12 + $0xa] sm:$0x3]  ;;  %v1515_v55 = vld [vmem:[%s1811_s12 + $0xe] sm:$0x3]  ;;  %v1517_v63 = vld [vmem:[%s1811_s12 + $0x10] sm:$0x3] }
  0x20   : > { %v1521_v0 = vld [vmem:[%s1811_s12 + $0x14] sm:$0x3]  ;;  %v1519_v1 = vld [vmem:[%s1811_s12 + $0x12] sm:$0x3]  ;;  %v1525_v17 = vld [vmem:[%s1811_s12 + $0x18] sm:$0x3] }
  0x22   : > { %495 = vrot.lane.b32.xlu1 %v492_v4, %s1650_s20  ;;  %543 = vrot.lane.b32.xlu0 %v492_v4, %s1975_s21 }
  0x23   : > { %571 = vrot.lane.b32.xlu2 %v492_v4, %s1652_s22 }
  0x2a   : > { %655 = vrot.lane.b32.xlu1 %v492_v4, %s1653_s25  ;;  %653 = vrot.lane.b32.xlu0 %v491_v2, %s1653_s25 }
  0x2b   : > { %597 = vrot.lane.b32.xlu2 %v491_v2, %s1654_s26 }
  0x32   : > { %625 = vrot.lane.b32.xlu1 %v491_v2, %s1655_s18  ;;  %599 = vrot.lane.b32.xlu0 %v492_v4, %s1654_s26 }
  0x33   : > { %627 = vrot.lane.b32.xlu2 %v492_v4, %s1655_s18 }
  0x3a   : > { %683 = vrot.lane.b32.xlu1 %v492_v4, %s1656_s19  ;;  %681 = vrot.lane.b32.xlu0 %v491_v2, %s1656_s19 }
  0x3b   : > { %765 = vrot.lane.b32.xlu2 %v763_v7, %s1650_s20 }
  0x42   : > { %709 = vrot.lane.b32.xlu1 %v491_v2, %s1657_s23  ;;  %767 = vrot.lane.b32.xlu0 %v764_v9, %s1650_s20 }
  0x43   : > { %711 = vrot.lane.b32.xlu2 %v492_v4, %s1657_s23 }
  0x4a   : > { %794 = vrot.lane.b32.xlu1 %v764_v9, %s1975_s21  ;;  %792 = vrot.lane.b32.xlu0 %v763_v7, %s1975_s21  ;;  %s452_s21 = scalar_lea.vmem %s1968_s2, %s1497_s15 }
  0x4b   : > { %873 = vrot.lane.b32.xlu2 %v763_v7, %s1655_s18  ;;  %v1794_v10 = vld [vmem:[%s452_s21] sm:$0xff] }
  0x4c   : > { %v1005_v11 = vunpack.c.l.b16 %v1794_v10  ;;  %v1006_v13 = vunpack.c.h.b16 %v1794_v10 }
  0x4e   : > { %v1007_v12 = vpack.c.b16 %v1005_v11, %v1005_v11  ;;  %v1008_v14 = vpack.c.b16 %v1006_v13, %v1006_v13 }
  0x52   : > { %819 = vrot.lane.b32.xlu1 %v763_v7, %s1652_s22  ;;  %875 = vrot.lane.b32.xlu0 %v764_v9, %s1655_s18 }
  0x53   : > { %821 = vrot.lane.b32.xlu2 %v764_v9, %s1652_s22 }
  0x5a   : > { %848 = vrot.lane.b32.xlu1 %v764_v9, %s1654_s26  ;;  %846 = vrot.lane.b32.xlu0 %v763_v7, %s1654_s26 }
  0x5b   : > { %900 = vrot.lane.b32.xlu2 %v763_v7, %s1653_s25 }
  0x62   : > { %927 = vrot.lane.b32.xlu1 %v763_v7, %s1656_s19  ;;  %902 = vrot.lane.b32.xlu0 %v764_v9, %s1653_s25 }
  0x63   : > { %929 = vrot.lane.b32.xlu2 %v764_v9, %s1656_s19 }
  0x6a   : > { %956 = vrot.lane.b32.xlu1 %v764_v9, %s1657_s23  ;;  %954 = vrot.lane.b32.xlu0 %v763_v7, %s1657_s23  ;;  %v1523_v7 = vld [vmem:[%s1811_s12 + $0x16] sm:$0x3] }
  0x6b   : > { %1009 = vrot.lane.b32.xlu2 %v1007_v12, %s1650_s20 }
  0x72   : > { %1090 = vrot.lane.b32.xlu1 %v1007_v12, %s1654_s26  ;;  %1011 = vrot.lane.b32.xlu0 %v1008_v14, %s1650_s20 }
  0x73   : > { %1092 = vrot.lane.b32.xlu2 %v1008_v14, %s1654_s26 }
  0x75   : > { %v570_v15 = vpop.permute.xlu2 %569 }
  0x7a   : > { %1038 = vrot.lane.b32.xlu1 %v1008_v14, %s1977_s14  ;;  %1036 = vrot.lane.b32.xlu0 %v1007_v12, %s1977_s14 }
  0x7b   : > { %1063 = vrot.lane.b32.xlu2 %v1007_v12, %s1652_s22 }
  0x7d   : > { %v572_v18 = vpop.permute.xlu2 %571 }
  0x7e   : > { %v574_v19 = vsel %vm573_vm1, %v570_v15, %v572_v18  ;;  %v1529_v18 = vld [vmem:[%s1811_s12 + $0x1c] sm:$0x3] }
  0x7f   : > { %v579_v20 = vsel %vm503_vm0, %v574_v19, 0 }
  0x80   : > { %588 = vmatpush.bf16.msra.mxu3 %v579_v20 }
  0x82   : > { %1117 = vrot.lane.b32.xlu1 %v1007_v12, %s1655_s18  ;;  %1065 = vrot.lane.b32.xlu0 %v1008_v14, %s1652_s22 }
  0x83   : > { %1119 = vrot.lane.b32.xlu2 %v1008_v14, %s1655_s18  ;;  %1508 = vmatmul.msk.bf16.vlgmr.msra.gmra.mxu3 %vm499_vm2, %v1507_v21 }
  0x85   : > { %v598_v22 = vpop.permute.xlu2 %597 }
  0x8a   : > { %1200 = vrot.lane.b32.xlu1 %v1008_v14, %s1657_s23  ;;  %1198 = vrot.lane.b32.xlu0 %v1007_v12, %s1657_s23 }
  0x8b   : > { %1144 = vrot.lane.b32.xlu2 %v1007_v12, %s1653_s25 }
  0x8c   : > { %v494_v23 = vpop.permute.xlu1 %493  ;;  %v542_v24 = vpop.permute.xlu0 %541 }
  0x8d   : > { %v628_v25 = vpop.permute.xlu2 %627 }
  0x92   : > { %1146 = vrot.lane.b32.xlu0 %v1008_v14, %s1653_s25  ;;  %1171 = vrot.lane.b32.xlu1 %v1007_v12, %s1656_s19  ;;  %s1558_s25 = smul.u32 6, %s1989_s28 }
  0x93   : > { %1173 = vrot.lane.b32.xlu2 %v1008_v14, %s1656_s19  ;;  %v986_v14 = vsel %vm503_vm0, %v1794_v10, 0 }
  0x94   : > { %v496_v26 = vpop.permute.xlu1 %495  ;;  %v544_v27 = vpop.permute.xlu0 %543  ;;  %s464_s26 = sadd.s32 %s1558_s25, %s1995_s27 }
  0x95   : > { %v498_v28 = vsel %vm497_vm3, %v494_v23, %v496_v26  ;;  %v546_v29 = vsel %vm545_vm4, %v542_v24, %v544_v27  ;;  %v766_v30 = vpop.permute.xlu2 %765  ;;  %s1499_s23 = sshll.u32 %s464_s26, 1  ;;  %s1500_s27 = sshll.u32 %s464_s26, 2 }
  0x96   : > { %v505_v31 = vsel %vm503_vm0, %v498_v28, 0  ;;  %v551_v32 = vsel %vm503_vm0, %v546_v29, 0  ;;  %s466_s17 = scalar_lea.vmem %s1972_s6, %s1499_s23  ;;  %s474_s21 = scalar_lea.vmem %s1973_s7, %s1500_s27 }
  0x97   : > { %514 = vmatpush.bf16.msra.mxu0 %v505_v31  ;;  %560 = vmatpush.bf16.msra.mxu2 %v551_v32  ;;  %v1537_v31 = vld [vmem:[%s1811_s12 + $0x24] sm:$0x3]  ;;  %v1533_v32 = vld [vmem:[%s1811_s12 + $0x20] sm:$0x3]  ;;  %s482_s14 = scalar_lea.vmem %s1974_s8, %s1500_s27 }
  0x9a   : > { %1503 = vmatmul.msk.bf16.vlgmr.msra.gmra.mxu0 %vm499_vm2, %v1502_v33  ;;  %1506 = vmatmul.msk.bf16.vlgmr.msra.gmra.mxu2 %vm499_vm2, %v1505_v34 }
  0x9c   : > { %v656_v35 = vpop.permute.xlu1 %655  ;;  %v654_v36 = vpop.permute.xlu0 %653 }
  0x9d   : > { %v658_v37 = vsel %vm657_vm5, %v654_v36, %v656_v35  ;;  %v712_v38 = vpop.permute.xlu2 %711 }
  0x9e   : > { %v663_v39 = vsel %vm503_vm0, %v658_v37, 0 }
  0x9f   : > { %672 = vmatpush.bf16.msrb.mxu2 %v663_v39 }
  0xa4   : > { %v626_v40 = vpop.permute.xlu1 %625  ;;  %v600_v41 = vpop.permute.xlu0 %599 }
  0xa5   : > { %v602_v42 = vsel %vm601_vm6, %v598_v22, %v600_v41  ;;  %v630_v43 = vsel %vm629_vm7, %v626_v40, %v628_v25  ;;  %v874_v49 = vpop.permute.xlu2 %873  ;;  %v1527_v22 = vld [vmem:[%s1811_s12 + $0x1a] sm:$0x3] }
  0xa6   : > { %v607_v45 = vsel %vm503_vm0, %v602_v42, 0  ;;  %v635_v46 = vsel %vm503_vm0, %v630_v43, 0 }
  0xa7   : > { %616 = vmatpush.bf16.msrb.mxu0 %v607_v45  ;;  %644 = vmatpush.bf16.msrb.mxu1 %v635_v46  ;;  %v1539_v46 = vld [vmem:[%s1811_s12 + $0x26] sm:$0x3] }
  0xaa   : > { %1510 = vmatmul.msk.bf16.vlgmr.msrb.gmra.mxu0 %vm499_vm2, %v1509_v47  ;;  %1514 = vmatmul.msk.bf16.vlgmr.msrb.gmra.mxu2 %vm499_vm2, %v1513_v48  ;;  %v1545_v47 = vld [vmem:[%s1811_s12 + $0x2c] sm:$0x3]  ;;  %v1658_v48 = vmov 0  }
  0xab   : > { %751 = vmatpush.bf16.msra.mxu1 %v742_v44  ;;  %1608 = vset.pattern.permute.xlu0 %v1658_v48 }
  0xac   : > { %1512 = vmatmul.msk.bf16.vlgmr.msrb.gmra.mxu1 %vm499_vm2, %v1511_v50  ;;  %v684_v51 = vpop.permute.xlu1 %683  ;;  %v682_v52 = vpop.permute.xlu0 %681 }
  0xad   : > { %v686_v53 = vsel %vm685_vm8, %v682_v52, %v684_v51  ;;  %v822_v56 = vpop.permute.xlu2 %821 }
  0xae   : > { %v691_v54 = vsel %vm503_vm0, %v686_v53, 0 }
  0xaf   : > { %700 = vmatpush.bf16.msrb.mxu3 %v691_v54  ;;  %v1541_v54 = vld [vmem:[%s1811_s12 + $0x28] sm:$0x3] }
  0xb2   : > { %1516 = vmatmul.msk.bf16.vlgmr.msrb.gmra.mxu3 %vm499_vm2, %v1515_v55 }
  0xb4   : > { %v710_v57 = vpop.permute.xlu1 %709  ;;  %v768_v58 = vpop.permute.xlu0 %767 }
  0xb5   : > { %v714_v59 = vsel %vm713_vm9, %v710_v57, %v712_v38  ;;  %v769_v60 = vsel %vm497_vm3, %v766_v30, %v768_v58  ;;  %v901_v2 = vpop.permute.xlu2 %900  ;;  %v1531_v30 = vld [vmem:[%s1811_s12 + $0x1e] sm:$0x3]  ;;  %v1535_v38 = vld [vmem:[%s1811_s12 + $0x22] sm:$0x3] }
  0xb6   : > { %v719_v61 = vsel %vm503_vm0, %v714_v59, 0  ;;  %v774_v62 = vsel %vm503_vm0, %v769_v60, 0 }
  0xb7   : > { %783 = vmatpush.bf16.msra.mxu2 %v774_v62  ;;  %728 = vmatpush.bf16.msra.mxu0 %v719_v61  ;;  %v1543_v61 = vld [vmem:[%s1811_s12 + $0x2a] sm:$0x3]  ;;  %v1547_v62 = vld [vmem:[%s1811_s12 + $0x2e] sm:$0x3] }
  0xba   : > { %1518 = vmatmul.msk.bf16.vlgmr.msra.gmra.mxu0 %vm499_vm2, %v1517_v63  ;;  %1522 = vmatmul.msk.bf16.vlgmr.msra.gmra.mxu2 %vm499_vm2, %v1521_v0  ;;  %v1223_v63 = vld [vmem:[%s1970_s4] sm:$0xf] }
  0xbb   : > { %1226 = vperm.xlu0 %1608, %v1223_v63  }
  0xbc   : > { %1520 = vmatmul.msk.bf16.vlgmr.msra.gmra.mxu1 %vm499_vm2, %v1519_v1  ;;  %v795_v3 = vpop.permute.xlu1 %794  ;;  %v793_v4 = vpop.permute.xlu0 %792 }
  0xbd   : > { %v796_v5 = vsel %vm545_vm4, %v793_v4, %v795_v3  ;;  %v930_v13 = vpop.permute.xlu2 %929  ;;  %v535_v1 = vpop.f32.mrf.mxu1 }
  0xbe   : > { %v801_v6 = vsel %vm503_vm0, %v796_v5, 0 }
  0xbf   : > { %810 = vmatpush.bf16.msra.mxu3 %v801_v6  ;;  %v1553_v6 = vld [vmem:[%s1811_s12 + $0x34] sm:$0x3] }
  0xc2   : > { %1524 = vmatmul.msk.bf16.vlgmr.msra.gmra.mxu3 %vm499_vm2, %v1523_v7 }
  0xc4   : > { %v820_v8 = vpop.permute.xlu1 %819  ;;  %v876_v9 = vpop.permute.xlu0 %875 }
  0xc5   : > { %v823_v11 = vsel %vm573_vm1, %v820_v8, %v822_v56  ;;  %v877_v12 = vsel %vm629_vm7, %v874_v49, %v876_v9  ;;  %v1010_v23 = vpop.permute.xlu2 %1009  ;;  %v537_v7 = vpop.f32.mrf.mxu1 }
  0xc6   : > { %v828_v15 = vsel %vm503_vm0, %v823_v11, 0  ;;  %v882_v16 = vsel %vm503_vm0, %v877_v12, 0 }
  0xc7   : > { %891 = vmatpush.bf16.msrb.mxu2 %v882_v16  ;;  %837 = vmatpush.bf16.msrb.mxu0 %v828_v15 }
  0xca   : > { %1526 = vmatmul.msk.bf16.vlgmr.msrb.gmra.mxu0 %vm499_vm2, %v1525_v17  ;;  %1530 = vmatmul.msk.bf16.vlgmr.msrb.gmra.mxu2 %vm499_vm2, %v1529_v18  ;;  %v1549_v17 = vld [vmem:[%s1811_s12 + $0x30] sm:$0x3]  ;;  %v1551_v18 = vld [vmem:[%s1811_s12 + $0x32] sm:$0x3] }
  0xcb   : > { %995 = vmatpush.bf16.msra.mxu2 %v986_v14 }
  0xcc   : > { %v849_v19 = vpop.permute.xlu1 %848  ;;  %v847_v20 = vpop.permute.xlu0 %846 }
  0xcd   : > { %v850_v21 = vsel %vm601_vm6, %v847_v20, %v849_v19  ;;  %v1093_v33 = vpop.permute.xlu2 %1092 }
  0xce   : > { %v855_v10 = vsel %vm503_vm0, %v850_v21, 0 }
  0xcf   : > { %864 = vmatpush.bf16.msrb.mxu1 %v855_v10 }
  0xd2   : > { %1528 = vmatmul.msk.bf16.vlgmr.msrb.gmra.mxu1 %vm499_vm2, %v1527_v22 }
  0xd4   : > { %v928_v24 = vpop.permute.xlu1 %927  ;;  %v903_v25 = vpop.permute.xlu0 %902 }
  0xd5   : > { %v931_v26 = vsel %vm685_vm8, %v928_v24, %v930_v13  ;;  %v904_v27 = vsel %vm657_vm5, %v901_v2, %v903_v25  ;;  %v1064_v39 = vpop.permute.xlu2 %1063 }
  0xd6   : > { %v936_v28 = vsel %vm503_vm0, %v931_v26, 0  ;;  %v909_v29 = vsel %vm503_vm0, %v904_v27, 0 }
  0xd7   : > { %918 = vmatpush.bf16.msrb.mxu3 %v909_v29  ;;  %945 = vmatpush.bf16.msra.mxu0 %v936_v28 }
  0xda   : > { %1532 = vmatmul.msk.bf16.vlgmr.msrb.gmra.mxu3 %vm499_vm2, %v1531_v30  ;;  %1538 = vmatmul.msk.bf16.vlgmr.msra.gmra.mxu2 %vm499_vm2, %v1537_v31 }
  0xdb   : > { %1534 = vmatmul.msk.bf16.vlgmr.msra.gmra.mxu0 %vm499_vm2, %v1533_v32 }
  0xdc   : > { %v957_v34 = vpop.permute.xlu1 %956  ;;  %v955_v35 = vpop.permute.xlu0 %954 }
  0xdd   : > { %v958_v36 = vsel %vm713_vm9, %v955_v35, %v957_v34  ;;  %v1120_v53 = vpop.permute.xlu2 %1119 }
  0xde   : > { %v963_v37 = vsel %vm503_vm0, %v958_v36, 0 }
  0xdf   : > { %972 = vmatpush.bf16.msra.mxu1 %v963_v37 }
  0xe2   : > { %1536 = vmatmul.msk.bf16.vlgmr.msra.gmra.mxu1 %vm499_vm2, %v1535_v38 }
  0xe4   : > { %v1091_v40 = vpop.permute.xlu1 %1090  ;;  %v1012_v41 = vpop.permute.xlu0 %1011 }
  0xe5   : > { %v1094_v42 = vsel %vm601_vm6, %v1091_v40, %v1093_v33  ;;  %v1013_v43 = vsel %vm497_vm3, %v1010_v23, %v1012_v41  ;;  %v1145_v0 = vpop.permute.xlu2 %1144 }
  0xe6   : > { %v1099_v44 = vsel %vm503_vm0, %v1094_v42, 0  ;;  %v1018_v45 = vsel %vm503_vm0, %v1013_v43, 0 }
  0xe7   : > { %1027 = vmatpush.bf16.msra.mxu3 %v1018_v45  ;;  %1108 = vmatpush.bf16.msrb.mxu2 %v1099_v44 }
  0xea   : > { %1540 = vmatmul.msk.bf16.vlgmr.msra.gmra.mxu3 %vm499_vm2, %v1539_v46  ;;  %1546 = vmatmul.msk.bf16.vlgmr.msrb.gmra.mxu2 %vm499_vm2, %v1545_v47 }
  0xec   : > { %v1039_v49 = vpop.permute.xlu1 %1038  ;;  %v1037_v50 = vpop.permute.xlu0 %1036 }
  0xed   : > { %v1040_v51 = vsel %vm545_vm4, %v1037_v50, %v1039_v49  ;;  %v1174_v8 = vpop.permute.xlu2 %1173 }
  0xee   : > { %v1045_v52 = vsel %vm503_vm0, %v1040_v51, 0 }
  0xef   : > { %1054 = vmatpush.bf16.msrb.mxu0 %v1045_v52 }
  0xf2   : > { %1542 = vmatmul.msk.bf16.vlgmr.msrb.gmra.mxu0 %vm499_vm2, %v1541_v54 }
  0xf4   : > { %v1118_v55 = vpop.permute.xlu1 %1117  ;;  %v1066_v56 = vpop.permute.xlu0 %1065 }
  0xf5   : > { %v1121_v57 = vsel %vm629_vm7, %v1118_v55, %v1120_v53  ;;  %v1067_v58 = vsel %vm573_vm1, %v1064_v39, %v1066_v56 }
  0xf6   : > { %v1126_v59 = vsel %vm503_vm0, %v1121_v57, 0  ;;  %v1072_v60 = vsel %vm503_vm0, %v1067_v58, 0 }
  0xf7   : > { %1081 = vmatpush.bf16.msrb.mxu1 %v1072_v60  ;;  %1135 = vmatpush.bf16.msrb.mxu3 %v1126_v59 }
  0xfa   : > { %1544 = vmatmul.msk.bf16.vlgmr.msrb.gmra.mxu1 %vm499_vm2, %v1543_v61  ;;  %1548 = vmatmul.msk.bf16.vlgmr.msrb.gmra.mxu3 %vm499_vm2, %v1547_v62 }
  0xfc   : > { %v1201_v2 = vpop.permute.xlu1 %1200  ;;  %v1199_v3 = vpop.permute.xlu0 %1198 }
  0xfd   : > { %v1202_v4 = vsel %vm713_vm9, %v1199_v3, %v1201_v2 }
  0xfe   : > { %v1207_v5 = vsel %vm503_vm0, %v1202_v4, 0 }
  0xff   : > { %1216 = vmatpush.bf16.msra.mxu2 %v1207_v5 }
 0x102   : > { %1554 = vmatmul.msk.bf16.vlgmr.msra.gmra.mxu2 %vm499_vm2, %v1553_v6 }
 0x104   : > { %v1147_v9 = vpop.permute.xlu0 %1146  ;;  %v1172_v11 = vpop.permute.xlu1 %1171 }
 0x105   : > { %v1148_v12 = vsel %vm657_vm5, %v1145_v0, %v1147_v9  ;;  %v1175_v13 = vsel %vm685_vm8, %v1172_v11, %v1174_v8 }
 0x106   : > { %v1153_v14 = vsel %vm503_vm0, %v1148_v12, 0  ;;  %v1180_v15 = vsel %vm503_vm0, %v1175_v13, 0  ;;  %v590_v16 = vpop.f32.mrf.mxu3 }
 0x107   : > { %1162 = vmatpush.bf16.msra.mxu0 %v1153_v14  ;;  %1189 = vmatpush.bf16.msra.mxu1 %v1180_v15 }
 0x10a   : > { %1550 = vmatmul.msk.bf16.vlgmr.msra.gmra.mxu0 %vm499_vm2, %v1549_v17  ;;  %1552 = vmatmul.msk.bf16.vlgmr.msra.gmra.mxu1 %vm499_vm2, %v1551_v18 }
 0x10e   : > { %v592_v19 = vpop.f32.mrf.mxu3 }
 0x117   : > { %v516_v20 = vpop.f32.mrf.mxu0 }
 0x118   : > { %v536_v21 = vadd.f32 %v535_v1, %v516_v20 }
 0x11d   : > { %v562_v10 = vpop.f32.mrf.mxu2 }
 0x11e   : > { %v566_v22 = vadd.f32 %v562_v10, %v536_v21 }
 0x11f   : > { %v518_v23 = vpop.f32.mrf.mxu0 }
 0x120   : > { %v594_v24 = vadd.f32 %v590_v16, %v566_v22 }
 0x125   : > { %v564_v25 = vpop.f32.mrf.mxu2 }
 0x127   : > { %v618_v26 = vpop.f32.mrf.mxu0 }
 0x128   : > { %v622_v42 = vadd.f32 %v618_v26, %v594_v24 }
 0x129   : > { %v646_v27 = vpop.f32.mrf.mxu1 }
 0x12a   : > { %v650_v45 = vadd.f32 %v646_v27, %v622_v42 }
 0x12d   : > { %v674_v28 = vpop.f32.mrf.mxu2  ;;  %v1227_v27 = vpop.permute.xlu0 %1226 }
 0x12e   : > { %v678_v48 = vadd.f32 %v674_v28, %v650_v45 }
 0x12f   : > { %v620_v29 = vpop.f32.mrf.mxu0 }
 0x130   : > { %v1609_v29 = vld [vmem:[%s1971_s5] ss:$0 sm:$0xff] }
 0x131   : > { %v648_v30 = vpop.f32.mrf.mxu1 }
 0x135   : > { %v702_v31 = vpop.f32.mrf.mxu3  ;;  %v676_v32 = vpop.f32.mrf.mxu2 }
 0x136   : > { %v706_v49 = vadd.f32 %v702_v31, %v678_v48 }
 0x137   : > { %v730_v33 = vpop.f32.mrf.mxu0 }
 0x138   : > { %v734_v52 = vadd.f32 %v730_v33, %v706_v49 }
 0x139   : > { %v753_v34 = vpop.f32.mrf.mxu1 }
 0x13a   : > { %v757_v54 = vadd.f32 %v753_v34, %v734_v52 }
 0x13d   : > { %v704_v35 = vpop.f32.mrf.mxu3  ;;  %v785_v36 = vpop.f32.mrf.mxu2 }
 0x13e   : > { %v789_v57 = vadd.f32 %v785_v36, %v757_v54 }
 0x13f   : > { %v732_v37 = vpop.f32.mrf.mxu0 }
 0x141   : > { %v755_v38 = vpop.f32.mrf.mxu1 }
 0x145   : > { %v812_v39 = vpop.f32.mrf.mxu3  ;;  %v787_v40 = vpop.f32.mrf.mxu2 }
 0x146   : > { %v816_v59 = vadd.f32 %v812_v39, %v789_v57 }
 0x147   : > { %v839_v41 = vpop.f32.mrf.mxu0 }
 0x148   : > { %v843_v61 = vadd.f32 %v839_v41, %v816_v59 }
 0x14d   : > { %v893_v43 = vpop.f32.mrf.mxu2  ;;  %v814_v44 = vpop.f32.mrf.mxu3 }
 0x14f   : > { %v866_v46 = vpop.f32.mrf.mxu1  ;;  %v841_v47 = vpop.f32.mrf.mxu0 }
 0x150   : > { %v870_v0 = vadd.f32 %v866_v46, %v843_v61 }
 0x152   : > { %v897_v2 = vadd.f32 %v893_v43, %v870_v0 }
 0x155   : > { %v895_v50 = vpop.f32.mrf.mxu2 }
 0x157   : > { %v868_v51 = vpop.f32.mrf.mxu1 }
 0x158   : > { %v947_v53 = vpop.f32.mrf.mxu0 }
 0x15d   : > { %v920_v55 = vpop.f32.mrf.mxu3  ;;  %v997_v56 = vpop.f32.mrf.mxu2 }
 0x15e   : > { %v924_v3 = vadd.f32 %v920_v55, %v897_v2 }
 0x15f   : > { %v974_v58 = vpop.f32.mrf.mxu1 }
 0x160   : > { %v949_v60 = vpop.f32.mrf.mxu0  ;;  %v951_v7 = vadd.f32 %v947_v53, %v924_v3 }
 0x162   : > { %v978_v8 = vadd.f32 %v974_v58, %v951_v7 }
 0x164   : > { %v1001_v14 = vadd.f32 %v997_v56, %v978_v8 }
 0x165   : > { %v922_v62 = vpop.f32.mrf.mxu3  ;;  %v999_v63 = vpop.f32.mrf.mxu2 }
 0x167   : > { %v976_v1 = vpop.f32.mrf.mxu1 }
 0x16d   : > { %v1029_v4 = vpop.f32.mrf.mxu3  ;;  %v1110_v5 = vpop.f32.mrf.mxu2 }
 0x16e   : > { %v1033_v15 = vadd.f32 %v1029_v4, %v1001_v14 }
 0x16f   : > { %v1056_v6 = vpop.f32.mrf.mxu0 }
 0x170   : > { %v1060_v17 = vadd.f32 %v1056_v6, %v1033_v15 }
 0x175   : > { %v1031_v9 = vpop.f32.mrf.mxu3  ;;  %v1112_v11 = vpop.f32.mrf.mxu2 }
 0x177   : > { %v1083_v12 = vpop.f32.mrf.mxu1  ;;  %v1058_v13 = vpop.f32.mrf.mxu0 }
 0x178   : > { %v1087_v19 = vadd.f32 %v1083_v12, %v1060_v17 }
 0x17a   : > { %v1114_v20 = vadd.f32 %v1110_v5, %v1087_v19 }
 0x17d   : > { %v1137_v16 = vpop.f32.mrf.mxu3 }
 0x17e   : > { %v1141_v22 = vadd.f32 %v1137_v16, %v1114_v20 }
 0x17f   : > { %v1085_v18 = vpop.f32.mrf.mxu1 }
 0x185   : > { %v1218_v21 = vpop.f32.mrf.mxu2  ;;  %v1139_v10 = vpop.f32.mrf.mxu3 }
 0x187   : > { %v1164_v23 = vpop.f32.mrf.mxu0  ;;  %v1191_v24 = vpop.f32.mrf.mxu1 }
 0x188   : > { %v1168_v25 = vadd.f32 %v1164_v23, %v1141_v22 }
 0x18a   : > { %v1195_v26 = vadd.f32 %v1191_v24, %v1168_v25 }
 0x18c   : > { %v1222_v28 = vadd.f32 %v1218_v21, %v1195_v26 }
 0x18d   : > { %v1220_v30 = vpop.f32.mrf.mxu2 }
 0x18e   : > { %v1229_v31 = vadd.f32 %v1227_v27, %v1222_v28 }
 0x18f   : > { %v1166_v32 = vpop.f32.mrf.mxu0  ;;  %v1193_v33 = vpop.f32.mrf.mxu1 }
 0x190   : > { %v1234_v34 = vmul.f32 %v1609_v29, %v1229_v31 }
 0x192   : > { %v1235_v35 = vpack.c.bf16 %v1234_v34, %v1234_v34  ;;  %v1237_v36 = vsel %vm503_vm0, %v1234_v34, 0.0  ;;  %v1242_v37 = vmul.f32 %v1234_v34, %v1234_v34 }
 0x193   : > { %1238 = vadd.xlane.f32.xlu1 %v1237_v36 }
 0x194   : > { %v1243_v38 = vsel %vm503_vm0, %v1242_v37, 0.0  ;;  %1236 = vst [vmem:[%s466_s17] sm:$0x3] %v1235_v35 }
 0x195   : > { %1244 = vadd.xlane.f32.xlu2 %v1243_v38 }
 0x206   : > { %v1239_v39 = vpop.xlane.xlu1 %1238 }
 0x207   : > { %1241 = vst.msk [vmem:[%s474_s21] sm:$0xf] %vm1240_vm10, %v1239_v39 }
 0x208   : > { %v1245_v40 = vpop.xlane.xlu2 %1244 }
 0x209   : > { %1246 = vst.msk [vmem:[%s482_s14] sm:$0xf] %vm1240_vm10, %v1245_v40 }
 0x20a PF: > { %s19_s9 = sadd.s32 1, %s1648_s9   ;;  %s1978_s27 = smov %s1640_s29 }
 0x20b   : > { %p16_p10 = scmp.ge.s32.totalorder %s19_s9, 14   ;;  %s1979_s28 = smov %s1644_s30 }
 0x20c   : > { %s1980_s29 = smov %s1983_s10  ;;  %s1981_s30 = smov %s1987_s11 }
 0x20d   :  { %18 = sbr.rel (!%p16_p10) target bundleno = 3 (0x3), region = 133 }

</bundles_post_ra>
